<compile_context>
chip_gen: v7x
topology: tpu7x:2x2x1
jax: 0.10.0
libtpu: 0.0.40
codegen_flags: <defaults>
</compile_context>

<pallas_src>
import functools

import jax
import jax.numpy as jnp
from jax.experimental import pallas as pl
from jax.experimental.pallas import tpu as pltpu

HIDDEN = 16                          # ConvLSTM hidden channels (from the module)
GATES = 4 * HIDDEN                   # i, f, o, g stacked (row order)
OFFSETS = tuple((dy, dx) for dy in (-1, 0, 1) for dx in (-1, 0, 1))
HP_ROWS = 9 * HIDDEN                 # 144 rows of an h 3x3 patch
XP_ROWS = 16                         # 9 x-patch rows + 1 ones row + 6 zero pad
KD = HP_ROWS + XP_ROWS               # 160: fused contraction dimension
ONES_ROW = HP_ROWS + 9               # 153: constant-1 row (bias fold)
FUSED_ROWS = GATES + 16              # 80: decoder gates + fused output-conv row + pad
OUT_ROW = GATES                      # row 64 of the fused decoder matmul = frame


# ----------------------------------------------------------------------------
# In-kernel helpers
# ----------------------------------------------------------------------------
def _store_patches(dst_ref, v, masks_ref, w):
    """Write the 9 shifted+masked copies of v (HIDDEN, N) f32 into rows
    [0, 9*HIDDEN) of the bf16 dst_ref — offset-major / channel-minor, zero
    padding realised through the precomputed 0/1 boundary masks."""
    c, n = v.shape
    for k, (dy, dx) in enumerate(OFFSETS):
        off = dy * w + dx
        piece = v if off == 0 else pltpu.roll(v, shift=(-off) % n, axis=1)
        if not (dy == 0 and dx == 0):
            piece = piece * masks_ref[k]           # (1, N) mask, sublane-broadcast
        dst_ref[pl.ds(k * c, c), :] = piece.astype(dst_ref.dtype)


def _lstm_update(gates, c_prev):
    """gates: (4*HIDDEN, N) f32, c_prev: (HIDDEN, N) f32 -> (h_next, c_next)."""
    i = jax.nn.sigmoid(gates[0 * HIDDEN:1 * HIDDEN, :])
    f = jax.nn.sigmoid(gates[1 * HIDDEN:2 * HIDDEN, :])
    o = jax.nn.sigmoid(gates[2 * HIDDEN:3 * HIDDEN, :])
    g = jnp.tanh(gates[3 * HIDDEN:4 * HIDDEN, :])
    c_next = f * c_prev + i * g
    h_next = o * jnp.tanh(c_next)
    return h_next, c_next


# ----------------------------------------------------------------------------
# Pallas kernels
# ----------------------------------------------------------------------------
def _encoder_kernel(w, masks_ref, xp_ref, wce_ref, hp_ref, c_out_ref, c_scr):
    """One encoder timestep per grid index.

    hp_ref (KD, N) bf16 is BOTH the assembled patch operand and the output:
      rows [0:144)   = 3x3 patch of h      (rebuilt in-kernel every step)
      rows [144:153) = 3x3 patch of x_t    (one aligned DMA'd tile per step)
      row  153       = 1.0 (bias fold);  rows [154:160) = 0
    """
    t = pl.program_id(0)

    @pl.when(t == 0)
    def _init():
        c_scr[...] = jnp.zeros_like(c_scr)
        hp_ref[pl.ds(0, HP_ROWS), :] = jnp.zeros(
            (HP_ROWS, hp_ref.shape[1]), hp_ref.dtype)          # h0 = 0

    # This step's x patch (+ ones + pad): one aligned 16-row bf16 store.
    hp_ref[pl.ds(HP_ROWS, XP_ROWS), :] = xp_ref[0]

    # Single fused gate matmul: [wh | wx | b | 0] @ [h-patch ; x-patch ; 1 ; 0].
    gates = jnp.dot(wce_ref[...], hp_ref[...],
                    preferred_element_type=jnp.float32)        # (64, N) f32
    h_next, c_next = _lstm_update(gates, c_scr[...])
    c_scr[...] = c_next

    # Rebuild the h patch rows for the next step (and for the final output).
    _store_patches(hp_ref, h_next, masks_ref, w)

    @pl.when(t == pl.num_programs(0) - 1)
    def _finalize():
        c_out_ref[...] = c_next


def _decoder_kernel(w, masks_ref, enc_hp_ref, c0_ref, wxf_ref, wfd_ref, out_ref,
                    c_scr, hp_scr, xg_scr):
    """Grid runs T+1 steps.  Step s does the fused matmul
         [dec_wh ; out_w (+out_b via ones row) ; 0] @ hp_{s-1}
    whose gate rows drive the LSTM update for step s (skipped at s==T) and
    whose row OUT_ROW is the output frame of step s-1 (garbage at s==0, which
    lands in the throwaway slot 0 of the (T+1)-row output)."""
    s = pl.program_id(0)
    last = pl.num_programs(0) - 1

    @pl.when(s == 0)
    def _init():
        c_scr[...] = c0_ref[...]
        hp_scr[...] = enc_hp_ref[...]          # hp_{-1} := patch(h_enc) (+x/1/0 rows)
        # The decoder's x-input is the fixed final encoder state, so its gate
        # contribution (incl. dec_b via the ones row) is constant -> once.
        xg_scr[...] = jnp.dot(wxf_ref[...], enc_hp_ref[...],
                              preferred_element_type=jnp.float32)

    res = jnp.dot(wfd_ref[...], hp_scr[...],
                  preferred_element_type=jnp.float32)          # (80, N) f32
    out_ref[0] = res[OUT_ROW:OUT_ROW + 1, :]                   # frame of step s-1

    @pl.when(s < last)
    def _step():
        gates = res[0:GATES, :] + xg_scr[...]
        h_next, c_next = _lstm_update(gates, c_scr[...])
        c_scr[...] = c_next
        _store_patches(hp_scr, h_next, masks_ref, w)


# ----------------------------------------------------------------------------
# Wrapper (layout prep + two pallas_call launches)
# ----------------------------------------------------------------------------
def _offset_masks(bsz, hh, ww):
    """(9, 1, N) f32 validity masks (1 inside the image, 0 where the 3x3 tap
    falls in zero padding); flat index n = b*H*W + y*W + x on the last axis."""
    yy = jnp.arange(hh).reshape(hh, 1)
    xx = jnp.arange(ww).reshape(1, ww)
    rows = []
    for dy, dx in OFFSETS:
        valid = ((yy + dy >= 0) & (yy + dy < hh) &
                 (xx + dx >= 0) & (xx + dx < ww)).astype(jnp.float32)
        rows.append(jnp.tile(valid.reshape(-1), (bsz,)).reshape(1, bsz * hh * ww))
    return jnp.stack(rows, axis=0)


def _x_patch_blocks(x, t_len, bsz, hh, ww):
    """(T, 16, N) bf16: rows 0..8 = zero-padded 3x3 patch of x_t (offset-major),
    row 9 = 1.0 (bias fold), rows 10..15 = 0."""
    n = bsz * hh * ww
    img = x.reshape(t_len, bsz, hh, ww)
    pad = jnp.pad(img, ((0, 0), (0, 0), (1, 1), (1, 1)))
    cols = [pad[:, :, 1 + dy:1 + dy + hh, 1 + dx:1 + dx + ww].reshape(t_len, 1, n)
            for dy, dx in OFFSETS]
    ones = jnp.ones((t_len, 1, n), jnp.float32)
    zero = jnp.zeros((t_len, XP_ROWS - 10, n), jnp.float32)
    return jnp.concatenate(cols + [ones, zero], axis=1).astype(jnp.bfloat16)


def _pack_weights(params):
    """bf16 weight packs with bias folded into the ONES_ROW column."""
    f32 = jnp.float32
    # encoder: [wh | wx | b | 0]  (GATES, KD)
    wce = jnp.zeros((GATES, KD), f32)
    wce = wce.at[:, :HP_ROWS].set(params["enc_wh"])
    wce = wce.at[:, HP_ROWS:HP_ROWS + 9].set(params["enc_wx"])
    wce = wce.at[:, ONES_ROW].set(params["enc_b"][:, 0])
    # decoder x-side (applied once): [dec_wx | 0 | dec_b | 0]  (GATES, KD)
    wxf = jnp.zeros((GATES, KD), f32)
    wxf = wxf.at[:, :HP_ROWS].set(params["dec_wx"])
    wxf = wxf.at[:, ONES_ROW].set(params["dec_b"][:, 0])
    # decoder recurrent + fused output conv: (FUSED_ROWS, KD)
    wfd = jnp.zeros((FUSED_ROWS, KD), f32)
    wfd = wfd.at[:GATES, :HP_ROWS].set(params["dec_wh"])
    wfd = wfd.at[OUT_ROW, :HP_ROWS].set(params["out_w"][0])
    wfd = wfd.at[OUT_ROW, ONES_ROW].set(params["out_b"][0, 0])
    bf16 = jnp.bfloat16
    return wce.astype(bf16), wxf.astype(bf16), wfd.astype(bf16)


def _vmem_limit_bytes():
    try:
        cap = pltpu.get_tpu_info().vmem_capacity_bytes
        return min(int(cap * 3 // 4), 100 * 1024 * 1024)   # ~96 MiB v5e/v6e, 48 MiB v7x
    except Exception:
        return 32 * 1024 * 1024


def convlstm_autoencoder_forward(x, params):
    """x: (T, B, 1, H, W) float32 (PyTorch layout).  Returns (T, B, 1, H, W)."""
    t_len, bsz, cin, hh, ww = x.shape
    assert cin == 1, "module fixes the input to 1 channel"
    n = bsz * hh * ww

    masks = _offset_masks(bsz, hh, ww)                 # (9, 1, N) f32
    xp = _x_patch_blocks(x, t_len, bsz, hh, ww)        # (T, 16, N) bf16
    wce, wxf, wfd = _pack_weights(params)              # bf16 MXU operands

    cparams = pltpu.CompilerParams(
        dimension_semantics=("arbitrary",),            # h/c/patch carry across time
        vmem_limit_bytes=_vmem_limit_bytes())
    resident = dict(pipeline_mode=pl.Buffered(1))      # single-buffer constant blocks

    # ---- encoder: one launch, T sequential grid steps ----
    enc_hp, c_enc = pl.pallas_call(
        functools.partial(_encoder_kernel, ww),
        out_shape=(jax.ShapeDtypeStruct((KD, n), jnp.bfloat16),
                   jax.ShapeDtypeStruct((HIDDEN, n), jnp.float32)),
        grid_spec=pltpu.PrefetchScalarGridSpec(
            num_scalar_prefetch=0,
            grid=(t_len,),
            in_specs=[
                pl.BlockSpec((9, 1, n), lambda t: (0, 0, 0), **resident),     # masks
                pl.BlockSpec((1, XP_ROWS, n), lambda t: (t, 0, 0)),           # x patch
                pl.BlockSpec((GATES, KD), lambda t: (0, 0), **resident),      # weights
            ],
            out_specs=(
                pl.BlockSpec((KD, n), lambda t: (0, 0)),       # final [h|x|1|0] patch
                pl.BlockSpec((HIDDEN, n), lambda t: (0, 0)),   # final c
            ),
            scratch_shapes=[pltpu.VMEM((HIDDEN, n), jnp.float32)]),
        compiler_params=cparams,
    )(masks, xp, wce)

    # ---- decoder (+ fused output conv): one launch, T+1 grid steps ----
    out_rows = pl.pallas_call(
        functools.partial(_decoder_kernel, ww),
        out_shape=jax.ShapeDtypeStruct((t_len + 1, 1, n), jnp.float32),
        grid_spec=pltpu.PrefetchScalarGridSpec(
            num_scalar_prefetch=0,
            grid=(t_len + 1,),
            in_specs=[
                pl.BlockSpec((9, 1, n), lambda s: (0, 0, 0), **resident),     # masks
                pl.BlockSpec((KD, n), lambda s: (0, 0), **resident),          # enc patch
                pl.BlockSpec((HIDDEN, n), lambda s: (0, 0), **resident),      # c0
                pl.BlockSpec((GATES, KD), lambda s: (0, 0), **resident),      # dec_wx(+b)
                pl.BlockSpec((FUSED_ROWS, KD), lambda s: (0, 0), **resident), # wh+out_w
            ],
            out_specs=pl.BlockSpec((1, 1, n), lambda s: (s, 0, 0)),
            scratch_shapes=[
                pltpu.VMEM((HIDDEN, n), jnp.float32),          # c state
                pltpu.VMEM((KD, n), jnp.bfloat16),             # h patch state
                pltpu.VMEM((GATES, n), jnp.float32),           # const x-gate (+bias)
            ]),
        compiler_params=cparams,
    )(masks, enc_hp, c_enc, wxf, wfd)

    out = out_rows[1:].reshape(t_len, bsz, hh, ww)     # drop the slot-0 garbage frame
    return out[:, :, None, :, :]                       # (T, B, 1, H, W)


# ----------------------------------------------------------------------------
# Parameters (synthetic, shapes implied by the PyTorch module)
# ----------------------------------------------------------------------------
def init_params(key):
    ks = jax.random.split(key, 8)
    scale = 0.1
    nrm = jax.random.normal
    return {
        # encoder ConvLSTMCell(1, 16, 3): conv weight split into x / h parts,
        # columns ordered (kh, kw, channel); gate rows ordered i, f, o, g.
        "enc_wx": scale * nrm(ks[0], (GATES, 9 * 1), jnp.float32),
        "enc_wh": scale * nrm(ks[1], (GATES, HP_ROWS), jnp.float32),
        "enc_b":  scale * nrm(ks[2], (GATES, 1), jnp.float32),
        # decoder ConvLSTMCell(16, 16, 3)
        "dec_wx": scale * nrm(ks[3], (GATES, HP_ROWS), jnp.float32),
        "dec_wh": scale * nrm(ks[4], (GATES, HP_ROWS), jnp.float32),
        "dec_b":  scale * nrm(ks[5], (GATES, 1), jnp.float32),
        # output Conv2d(16, 1, 3)
        "out_w":  scale * nrm(ks[6], (1, HP_ROWS), jnp.float32),
        "out_b":  scale * nrm(ks[7], (1, 1), jnp.float32),
    }


# ----------------------------------------------------------------------------
# Pure-jnp reference (same math, f32, no Pallas) for a sanity check
# ----------------------------------------------------------------------------
def _im2col_3x3(x_nhwc):
    b, h, w, c = x_nhwc.shape
    xp = jnp.pad(x_nhwc, ((0, 0), (1, 1), (1, 1), (0, 0)))
    cols = [xp[:, dy:dy + h, dx:dx + w, :] for dy in range(3) for dx in range(3)]
    return jnp.concatenate(cols, axis=-1).reshape(b * h * w, 9 * c)


def _cell_step_ref(xpatch, hpatch, c, wx, wh, bias):
    hi = jax.lax.Precision.HIGHEST
    gates = (jnp.dot(xpatch, wx.T, precision=hi)
             + jnp.dot(hpatch, wh.T, precision=hi) + bias.T)
    i = jax.nn.sigmoid(gates[:, 0 * HIDDEN:1 * HIDDEN])
    f = jax.nn.sigmoid(gates[:, 1 * HIDDEN:2 * HIDDEN])
    o = jax.nn.sigmoid(gates[:, 2 * HIDDEN:3 * HIDDEN])
    g = jnp.tanh(gates[:, 3 * HIDDEN:4 * HIDDEN])
    c_next = f * c + i * g
    return o * jnp.tanh(c_next), c_next


def reference_forward(x, params):
    t_len, b, _, h, w = x.shape
    n = b * h * w
    x_nhwc = jnp.transpose(x, (0, 1, 3, 4, 2))
    h_e = jnp.zeros((n, HIDDEN), jnp.float32)
    c_e = jnp.zeros((n, HIDDEN), jnp.float32)
    for t in range(t_len):
        h_e, c_e = _cell_step_ref(
            _im2col_3x3(x_nhwc[t]),
            _im2col_3x3(h_e.reshape(b, h, w, HIDDEN)), c_e,
            params["enc_wx"], params["enc_wh"], params["enc_b"])
    enc_hp = _im2col_3x3(h_e.reshape(b, h, w, HIDDEN))
    h_d, c_d = h_e, c_e
    outs = []
    for t in range(t_len):
        h_d, c_d = _cell_step_ref(
            enc_hp, _im2col_3x3(h_d.reshape(b, h, w, HIDDEN)), c_d,
            params["dec_wx"], params["dec_wh"], params["dec_b"])
        step = jnp.dot(_im2col_3x3(h_d.reshape(b, h, w, HIDDEN)),
                       params["out_w"].T,
                       precision=jax.lax.Precision.HIGHEST) + params["out_b"].T
        outs.append(step)
    out = jnp.stack(outs, axis=0).reshape(t_len, b, h, w, 1)
    return jnp.transpose(out, (0, 1, 4, 2, 3))


# ----------------------------------------------------------------------------
if __name__ == "__main__":
    key = jax.random.PRNGKey(0)
    k_param, k_data = jax.random.split(key)

    params = init_params(k_param)

    # x: (seq_len, batch, channels=1, H, W) — same layout as the PyTorch module
    T, B, C, H, W = 4, 2, 1, 8, 8
    x = jax.random.normal(k_data, (T, B, C, H, W), jnp.float32)

    fwd = jax.jit(convlstm_autoencoder_forward)
    out = jax.block_until_ready(fwd(x, params))
    assert out.shape == (T, B, 1, H, W), out.shape

    ref = jax.block_until_ready(reference_forward(x, params))
    max_err = float(jnp.max(jnp.abs(out - ref)))
    # tolerance re-baselined for bf16 MXU operands (f32 accumulation / state)
    assert max_err < 5e-2, f"mismatch vs reference: {max_err}"

    print("KERNEL_OK")
</pallas_src>

<mosaic_0001>
module attributes {stable_mosaic.version = 11 : i64} {
  func.func @_encoder_kernel(%arg0: i32, %arg1: memref<9x1x128xf32, #tpu.memory_space<vmem>>, %arg2: memref<1x16x128xbf16, #tpu.memory_space<vmem>>, %arg3: memref<64x160xbf16, #tpu.memory_space<vmem>>, %arg4: memref<160x128xbf16, #tpu.memory_space<vmem>>, %arg5: memref<16x128xf32, #tpu.memory_space<vmem>>, %arg6: memref<16x128xf32, #tpu.memory_space<vmem>>) attributes {dimension_semantics = [#tpu.dimension_semantics<arbitrary>], iteration_bounds = array<i64: 4>, scalar_prefetch = 0 : i64, scratch_operands = 1 : i64, tpu.core_type = #tpu.core_type<tc>, window_params = [{pipeline_mode = #tpu.pipeline_mode<synchronous>, transform_indices = @transform_0, window_bounds = array<i64: 9, 1, 128>}, {transform_indices = @transform_1, window_bounds = array<i64: 1, 16, 128>}, {pipeline_mode = #tpu.pipeline_mode<synchronous>, transform_indices = @transform_2, window_bounds = array<i64: 64, 160>}, {pipeline_mode = #tpu.pipeline_mode<synchronous>, transform_indices = @transform_3, window_bounds = array<i64: 160, 128>}, {pipeline_mode = #tpu.pipeline_mode<synchronous>, transform_indices = @transform_4, window_bounds = array<i64: 16, 128>}]} {
    %c0_i32 = arith.constant 0 : i32
    %0 = arith.cmpi eq, %arg0, %c0_i32 : i32
    %1 = arith.extui %0 : i1 to i32
    %c0_i32_0 = arith.constant 0 : i32
    %2 = arith.cmpi ne, %1, %c0_i32_0 : i32
    scf.if %2 {
      %cst_43 = arith.constant 0.000000e+00 : f32
      %97 = vector.broadcast %cst_43 : f32 to vector<16x128xf32>
      %c0_44 = arith.constant 0 : index
      %c0_45 = arith.constant 0 : index
      %98 = vector.load %arg6[%c0_44, %c0_45] : memref<16x128xf32, #tpu.memory_space<vmem>>, vector<16x128xf32>
      tpu.vector_store %arg6[%c0_44, %c0_45], %97 {strides = array<i32>} : memref<16x128xf32, #tpu.memory_space<vmem>>, vector<16x128xf32>,
      %cst_46 = arith.constant 0.000000e+00 : bf16
      %99 = vector.broadcast %cst_46 : bf16 to vector<144x128xbf16>
      %c0_47 = arith.constant 0 : index
      %c0_48 = arith.constant 0 : index
      %100 = vector.load %arg4[%c0_47, %c0_48] : memref<160x128xbf16, #tpu.memory_space<vmem>>, vector<144x128xbf16>
      tpu.vector_store %arg4[%c0_47, %c0_48], %99 {strides = array<i32>} : memref<160x128xbf16, #tpu.memory_space<vmem>>, vector<144x128xbf16>,
    } else {
    }
    %c0 = arith.constant 0 : index
    %c0_1 = arith.constant 0 : index
    %c0_2 = arith.constant 0 : index
    %3 = vector.load %arg2[%c0, %c0_1, %c0_2] : memref<1x16x128xbf16, #tpu.memory_space<vmem>>, vector<1x16x128xbf16>
    %4 = vector.shape_cast %3 : vector<1x16x128xbf16> to vector<16x128xbf16>
    %c144 = arith.constant 144 : index
    %c0_3 = arith.constant 0 : index
    %5 = vector.load %arg4[%c144, %c0_3] : memref<160x128xbf16, #tpu.memory_space<vmem>>, vector<16x128xbf16>
    tpu.vector_store %arg4[%c144, %c0_3], %4 {strides = array<i32>} : memref<160x128xbf16, #tpu.memory_space<vmem>>, vector<16x128xbf16>,
    %c0_4 = arith.constant 0 : index
    %c0_5 = arith.constant 0 : index
    %6 = vector.load %arg3[%c0_4, %c0_5] : memref<64x160xbf16, #tpu.memory_space<vmem>>, vector<64x160xbf16>
    %c0_6 = arith.constant 0 : index
    %c0_7 = arith.constant 0 : index
    %7 = vector.load %arg4[%c0_6, %c0_7] : memref<160x128xbf16, #tpu.memory_space<vmem>>, vector<160x128xbf16>
    %cst = arith.constant dense<0.000000e+00> : vector<64x128xf32>
    %8 = tpu.matmul %6, %7, %cst {dimension_numbers = #tpu.dot_dimension_numbers<[1], [0], [0], [1], [0, 0, 1, 1], [], []>} : vector<64x160xbf16>, vector<160x128xbf16>, vector<64x128xf32> -> vector<64x128xf32>
    %c0_8 = arith.constant 0 : index
    %c0_9 = arith.constant 0 : index
    %9 = vector.load %arg6[%c0_8, %c0_9] : memref<16x128xf32, #tpu.memory_space<vmem>>, vector<16x128xf32>
    %10 = vector.extract_strided_slice %8 {offsets = [0, 0], sizes = [16, 128], strides = [1, 1]} : vector<64x128xf32> to vector<16x128xf32>
    %11 = arith.negf %10 : vector<16x128xf32>
    %12 = math.exp %11 : vector<16x128xf32>
    %cst_10 = arith.constant 1.000000e+00 : f32
    %13 = vector.broadcast %cst_10 : f32 to vector<16x128xf32>
    %14 = arith.addf %13, %12 : vector<16x128xf32>
    %15 = arith.divf %13, %14 : vector<16x128xf32>
    %16 = vector.extract_strided_slice %8 {offsets = [16, 0], sizes = [16, 128], strides = [1, 1]} : vector<64x128xf32> to vector<16x128xf32>
    %17 = arith.negf %16 : vector<16x128xf32>
    %18 = math.exp %17 : vector<16x128xf32>
    %cst_11 = arith.constant 1.000000e+00 : f32
    %19 = vector.broadcast %cst_11 : f32 to vector<16x128xf32>
    %20 = arith.addf %19, %18 : vector<16x128xf32>
    %21 = arith.divf %19, %20 : vector<16x128xf32>
    %22 = vector.extract_strided_slice %8 {offsets = [32, 0], sizes = [16, 128], strides = [1, 1]} : vector<64x128xf32> to vector<16x128xf32>
    %23 = arith.negf %22 : vector<16x128xf32>
    %24 = math.exp %23 : vector<16x128xf32>
    %cst_12 = arith.constant 1.000000e+00 : f32
    %25 = vector.broadcast %cst_12 : f32 to vector<16x128xf32>
    %26 = arith.addf %25, %24 : vector<16x128xf32>
    %27 = arith.divf %25, %26 : vector<16x128xf32>
    %28 = vector.extract_strided_slice %8 {offsets = [48, 0], sizes = [16, 128], strides = [1, 1]} : vector<64x128xf32> to vector<16x128xf32>
    %29 = math.tanh %28 : vector<16x128xf32>
    %30 = arith.mulf %21, %9 : vector<16x128xf32>
    %31 = arith.mulf %15, %29 : vector<16x128xf32>
    %32 = arith.addf %30, %31 : vector<16x128xf32>
    %33 = math.tanh %32 : vector<16x128xf32>
    %34 = arith.mulf %27, %33 : vector<16x128xf32>
    %c0_13 = arith.constant 0 : index
    %c0_14 = arith.constant 0 : index
    %35 = vector.load %arg6[%c0_13, %c0_14] : memref<16x128xf32, #tpu.memory_space<vmem>>, vector<16x128xf32>
    tpu.vector_store %arg6[%c0_13, %c0_14], %32 {strides = array<i32>} : memref<16x128xf32, #tpu.memory_space<vmem>>, vector<16x128xf32>,
    %c9_i32 = arith.constant 9 : i32
    %36 = tpu.dynamic_rotate %34 by %c9_i32 dim 1 : vector<16x128xf32>, i32 -> vector<16x128xf32>
    %c0_15 = arith.constant 0 : index
    %c0_16 = arith.constant 0 : index
    %c0_17 = arith.constant 0 : index
    %37 = vector.load %arg1[%c0_15, %c0_16, %c0_17] : memref<9x1x128xf32, #tpu.memory_space<vmem>>, vector<1x1x128xf32>
    %38 = vector.shape_cast %37 : vector<1x1x128xf32> to vector<1x128xf32>
    %39 = vector.broadcast %38 : vector<1x128xf32> to vector<16x128xf32>
    %40 = arith.mulf %36, %39 : vector<16x128xf32>
    %41 = arith.truncf %40 : vector<16x128xf32> to vector<16x128xbf16>
    %c0_18 = arith.constant 0 : index
    %c0_19 = arith.constant 0 : index
    %42 = vector.load %arg4[%c0_18, %c0_19] : memref<160x128xbf16, #tpu.memory_space<vmem>>, vector<16x128xbf16>
    tpu.vector_store %arg4[%c0_18, %c0_19], %41 {strides = array<i32>} : memref<160x128xbf16, #tpu.memory_space<vmem>>, vector<16x128xbf16>,
    %c8_i32 = arith.constant 8 : i32
    %43 = tpu.dynamic_rotate %34 by %c8_i32 dim 1 : vector<16x128xf32>, i32 -> vector<16x128xf32>
    %c1 = arith.constant 1 : index
    %c0_20 = arith.constant 0 : index
    %c0_21 = arith.constant 0 : index
    %44 = vector.load %arg1[%c1, %c0_20, %c0_21] : memref<9x1x128xf32, #tpu.memory_space<vmem>>, vector<1x1x128xf32>
    %45 = vector.shape_cast %44 : vector<1x1x128xf32> to vector<1x128xf32>
    %46 = vector.broadcast %45 : vector<1x128xf32> to vector<16x128xf32>
    %47 = arith.mulf %43, %46 : vector<16x128xf32>
    %48 = arith.truncf %47 : vector<16x128xf32> to vector<16x128xbf16>
    %c16 = arith.constant 16 : index
    %c0_22 = arith.constant 0 : index
    %49 = vector.load %arg4[%c16, %c0_22] : memref<160x128xbf16, #tpu.memory_space<vmem>>, vector<16x128xbf16>
    tpu.vector_store %arg4[%c16, %c0_22], %48 {strides = array<i32>} : memref<160x128xbf16, #tpu.memory_space<vmem>>, vector<16x128xbf16>,
    %c7_i32 = arith.constant 7 : i32
    %50 = tpu.dynamic_rotate %34 by %c7_i32 dim 1 : vector<16x128xf32>, i32 -> vector<16x128xf32>
    %c2 = arith.constant 2 : index
    %c0_23 = arith.constant 0 : index
    %c0_24 = arith.constant 0 : index
    %51 = vector.load %arg1[%c2, %c0_23, %c0_24] : memref<9x1x128xf32, #tpu.memory_space<vmem>>, vector<1x1x128xf32>
    %52 = vector.shape_cast %51 : vector<1x1x128xf32> to vector<1x128xf32>
    %53 = vector.broadcast %52 : vector<1x128xf32> to vector<16x128xf32>
    %54 = arith.mulf %50, %53 : vector<16x128xf32>
    %55 = arith.truncf %54 : vector<16x128xf32> to vector<16x128xbf16>
    %c32 = arith.constant 32 : index
    %c0_25 = arith.constant 0 : index
    %56 = vector.load %arg4[%c32, %c0_25] : memref<160x128xbf16, #tpu.memory_space<vmem>>, vector<16x128xbf16>
    tpu.vector_store %arg4[%c32, %c0_25], %55 {strides = array<i32>} : memref<160x128xbf16, #tpu.memory_space<vmem>>, vector<16x128xbf16>,
    %c1_i32 = arith.constant 1 : i32
    %57 = tpu.dynamic_rotate %34 by %c1_i32 dim 1 : vector<16x128xf32>, i32 -> vector<16x128xf32>
    %c3 = arith.constant 3 : index
    %c0_26 = arith.constant 0 : index
    %c0_27 = arith.constant 0 : index
    %58 = vector.load %arg1[%c3, %c0_26, %c0_27] : memref<9x1x128xf32, #tpu.memory_space<vmem>>, vector<1x1x128xf32>
    %59 = vector.shape_cast %58 : vector<1x1x128xf32> to vector<1x128xf32>
    %60 = vector.broadcast %59 : vector<1x128xf32> to vector<16x128xf32>
    %61 = arith.mulf %57, %60 : vector<16x128xf32>
    %62 = arith.truncf %61 : vector<16x128xf32> to vector<16x128xbf16>
    %c48 = arith.constant 48 : index
    %c0_28 = arith.constant 0 : index
    %63 = vector.load %arg4[%c48, %c0_28] : memref<160x128xbf16, #tpu.memory_space<vmem>>, vector<16x128xbf16>
    tpu.vector_store %arg4[%c48, %c0_28], %62 {strides = array<i32>} : memref<160x128xbf16, #tpu.memory_space<vmem>>, vector<16x128xbf16>,
    %64 = arith.truncf %34 : vector<16x128xf32> to vector<16x128xbf16>
    %c64 = arith.constant 64 : index
    %c0_29 = arith.constant 0 : index
    %65 = vector.load %arg4[%c64, %c0_29] : memref<160x128xbf16, #tpu.memory_space<vmem>>, vector<16x128xbf16>
    tpu.vector_store %arg4[%c64, %c0_29], %64 {strides = array<i32>} : memref<160x128xbf16, #tpu.memory_space<vmem>>, vector<16x128xbf16>,
    %c127_i32 = arith.constant 127 : i32
    %66 = tpu.dynamic_rotate %34 by %c127_i32 dim 1 : vector<16x128xf32>, i32 -> vector<16x128xf32>
    %c5 = arith.constant 5 : index
    %c0_30 = arith.constant 0 : index
    %c0_31 = arith.constant 0 : index
    %67 = vector.load %arg1[%c5, %c0_30, %c0_31] : memref<9x1x128xf32, #tpu.memory_space<vmem>>, vector<1x1x128xf32>
    %68 = vector.shape_cast %67 : vector<1x1x128xf32> to vector<1x128xf32>
    %69 = vector.broadcast %68 : vector<1x128xf32> to vector<16x128xf32>
    %70 = arith.mulf %66, %69 : vector<16x128xf32>
    %71 = arith.truncf %70 : vector<16x128xf32> to vector<16x128xbf16>
    %c80 = arith.constant 80 : index
    %c0_32 = arith.constant 0 : index
    %72 = vector.load %arg4[%c80, %c0_32] : memref<160x128xbf16, #tpu.memory_space<vmem>>, vector<16x128xbf16>
    tpu.vector_store %arg4[%c80, %c0_32], %71 {strides = array<i32>} : memref<160x128xbf16, #tpu.memory_space<vmem>>, vector<16x128xbf16>,
    %c121_i32 = arith.constant 121 : i32
    %73 = tpu.dynamic_rotate %34 by %c121_i32 dim 1 : vector<16x128xf32>, i32 -> vector<16x128xf32>
    %c6 = arith.constant 6 : index
    %c0_33 = arith.constant 0 : index
    %c0_34 = arith.constant 0 : index
    %74 = vector.load %arg1[%c6, %c0_33, %c0_34] : memref<9x1x128xf32, #tpu.memory_space<vmem>>, vector<1x1x128xf32>
    %75 = vector.shape_cast %74 : vector<1x1x128xf32> to vector<1x128xf32>
    %76 = vector.broadcast %75 : vector<1x128xf32> to vector<16x128xf32>
    %77 = arith.mulf %73, %76 : vector<16x128xf32>
    %78 = arith.truncf %77 : vector<16x128xf32> to vector<16x128xbf16>
    %c96 = arith.constant 96 : index
    %c0_35 = arith.constant 0 : index
    %79 = vector.load %arg4[%c96, %c0_35] : memref<160x128xbf16, #tpu.memory_space<vmem>>, vector<16x128xbf16>
    tpu.vector_store %arg4[%c96, %c0_35], %78 {strides = array<i32>} : memref<160x128xbf16, #tpu.memory_space<vmem>>, vector<16x128xbf16>,
    %c120_i32 = arith.constant 120 : i32
    %80 = tpu.dynamic_rotate %34 by %c120_i32 dim 1 : vector<16x128xf32>, i32 -> vector<16x128xf32>
    %c7 = arith.constant 7 : index
    %c0_36 = arith.constant 0 : index
    %c0_37 = arith.constant 0 : index
    %81 = vector.load %arg1[%c7, %c0_36, %c0_37] : memref<9x1x128xf32, #tpu.memory_space<vmem>>, vector<1x1x128xf32>
    %82 = vector.shape_cast %81 : vector<1x1x128xf32> to vector<1x128xf32>
    %83 = vector.broadcast %82 : vector<1x128xf32> to vector<16x128xf32>
    %84 = arith.mulf %80, %83 : vector<16x128xf32>
    %85 = arith.truncf %84 : vector<16x128xf32> to vector<16x128xbf16>
    %c112 = arith.constant 112 : index
    %c0_38 = arith.constant 0 : index
    %86 = vector.load %arg4[%c112, %c0_38] : memref<160x128xbf16, #tpu.memory_space<vmem>>, vector<16x128xbf16>
    tpu.vector_store %arg4[%c112, %c0_38], %85 {strides = array<i32>} : memref<160x128xbf16, #tpu.memory_space<vmem>>, vector<16x128xbf16>,
    %c119_i32 = arith.constant 119 : i32
    %87 = tpu.dynamic_rotate %34 by %c119_i32 dim 1 : vector<16x128xf32>, i32 -> vector<16x128xf32>
    %c8 = arith.constant 8 : index
    %c0_39 = arith.constant 0 : index
    %c0_40 = arith.constant 0 : index
    %88 = vector.load %arg1[%c8, %c0_39, %c0_40] : memref<9x1x128xf32, #tpu.memory_space<vmem>>, vector<1x1x128xf32>
    %89 = vector.shape_cast %88 : vector<1x1x128xf32> to vector<1x128xf32>
    %90 = vector.broadcast %89 : vector<1x128xf32> to vector<16x128xf32>
    %91 = arith.mulf %87, %90 : vector<16x128xf32>
    %92 = arith.truncf %91 : vector<16x128xf32> to vector<16x128xbf16>
    %c128 = arith.constant 128 : index
    %c0_41 = arith.constant 0 : index
    %93 = vector.load %arg4[%c128, %c0_41] : memref<160x128xbf16, #tpu.memory_space<vmem>>, vector<16x128xbf16>
    tpu.vector_store %arg4[%c128, %c0_41], %92 {strides = array<i32>} : memref<160x128xbf16, #tpu.memory_space<vmem>>, vector<16x128xbf16>,
    %c3_i32 = arith.constant 3 : i32
    %94 = arith.cmpi eq, %arg0, %c3_i32 : i32
    %95 = arith.extui %94 : i1 to i32
    %c0_i32_42 = arith.constant 0 : i32
    %96 = arith.cmpi ne, %95, %c0_i32_42 : i32
    scf.if %96 {
      %c0_43 = arith.constant 0 : index
      %c0_44 = arith.constant 0 : index
      %97 = vector.load %arg5[%c0_43, %c0_44] : memref<16x128xf32, #tpu.memory_space<vmem>>, vector<16x128xf32>
      tpu.vector_store %arg5[%c0_43, %c0_44], %32 {strides = array<i32>} : memref<16x128xf32, #tpu.memory_space<vmem>>, vector<16x128xf32>,
    } else {
    }
    return
  }
  func.func @transform_0(%arg0: i32) -> (i32, i32, i32) {
    %c0_i32 = arith.constant 0 : i32
    %c0_i32_0 = arith.constant 0 : i32
    %c0_i32_1 = arith.constant 0 : i32
    %c0_i32_2 = arith.constant 0 : i32
    return %c0_i32, %c0_i32_0, %c0_i32_1 : i32, i32, i32
  }
  func.func @transform_1(%arg0: i32) -> (i32, i32, i32) {
    %c0_i32 = arith.constant 0 : i32
    %c0_i32_0 = arith.constant 0 : i32
    %c0_i32_1 = arith.constant 0 : i32
    return %arg0, %c0_i32, %c0_i32_0 : i32, i32, i32
  }
  func.func @transform_2(%arg0: i32) -> (i32, i32) {
    %c0_i32 = arith.constant 0 : i32
    %c0_i32_0 = arith.constant 0 : i32
    %c0_i32_1 = arith.constant 0 : i32
    return %c0_i32, %c0_i32_0 : i32, i32
  }
  func.func @transform_3(%arg0: i32) -> (i32, i32) {
    %c0_i32 = arith.constant 0 : i32
    %c0_i32_0 = arith.constant 0 : i32
    %c0_i32_1 = arith.constant 0 : i32
    return %c0_i32, %c0_i32_0 : i32, i32
  }
  func.func @transform_4(%arg0: i32) -> (i32, i32) {
    %c0_i32 = arith.constant 0 : i32
    %c0_i32_0 = arith.constant 0 : i32
    %c0_i32_1 = arith.constant 0 : i32
    return %c0_i32, %c0_i32_0 : i32, i32
  }
}

module attributes {stable_mosaic.version = 11 : i64} {
  func.func @_decoder_kernel(%arg0: i32, %arg1: memref<9x1x128xf32, #tpu.memory_space<vmem>>, %arg2: memref<160x128xbf16, #tpu.memory_space<vmem>>, %arg3: memref<16x128xf32, #tpu.memory_space<vmem>>, %arg4: memref<64x160xbf16, #tpu.memory_space<vmem>>, %arg5: memref<80x160xbf16, #tpu.memory_space<vmem>>, %arg6: memref<1x1x128xf32, #tpu.memory_space<vmem>>, %arg7: memref<16x128xf32, #tpu.memory_space<vmem>>, %arg8: memref<160x128xbf16, #tpu.memory_space<vmem>>, %arg9: memref<64x128xf32, #tpu.memory_space<vmem>>) attributes {dimension_semantics = [#tpu.dimension_semantics<arbitrary>], iteration_bounds = array<i64: 5>, scalar_prefetch = 0 : i64, scratch_operands = 3 : i64, tpu.core_type = #tpu.core_type<tc>, window_params = [{pipeline_mode = #tpu.pipeline_mode<synchronous>, transform_indices = @transform_0, window_bounds = array<i64: 9, 1, 128>}, {pipeline_mode = #tpu.pipeline_mode<synchronous>, transform_indices = @transform_1, window_bounds = array<i64: 160, 128>}, {pipeline_mode = #tpu.pipeline_mode<synchronous>, transform_indices = @transform_2, window_bounds = array<i64: 16, 128>}, {pipeline_mode = #tpu.pipeline_mode<synchronous>, transform_indices = @transform_3, window_bounds = array<i64: 64, 160>}, {pipeline_mode = #tpu.pipeline_mode<synchronous>, transform_indices = @transform_4, window_bounds = array<i64: 80, 160>}, {transform_indices = @transform_5, window_bounds = array<i64: 1, 1, 128>}]} {
    %c0_i32 = arith.constant 0 : i32
    %0 = arith.cmpi eq, %arg0, %c0_i32 : i32
    %1 = arith.extui %0 : i1 to i32
    %c0_i32_0 = arith.constant 0 : i32
    %2 = arith.cmpi ne, %1, %c0_i32_0 : i32
    scf.if %2 {
      %c0_8 = arith.constant 0 : index
      %c0_9 = arith.constant 0 : index
      %13 = vector.load %arg3[%c0_8, %c0_9] : memref<16x128xf32, #tpu.memory_space<vmem>>, vector<16x128xf32>
      %c0_10 = arith.constant 0 : index
      %c0_11 = arith.constant 0 : index
      %14 = vector.load %arg7[%c0_10, %c0_11] : memref<16x128xf32, #tpu.memory_space<vmem>>, vector<16x128xf32>
      tpu.vector_store %arg7[%c0_10, %c0_11], %13 {strides = array<i32>} : memref<16x128xf32, #tpu.memory_space<vmem>>, vector<16x128xf32>,
      %c0_12 = arith.constant 0 : index
      %c0_13 = arith.constant 0 : index
      %15 = vector.load %arg2[%c0_12, %c0_13] : memref<160x128xbf16, #tpu.memory_space<vmem>>, vector<160x128xbf16>
      %c0_14 = arith.constant 0 : index
      %c0_15 = arith.constant 0 : index
      %16 = vector.load %arg8[%c0_14, %c0_15] : memref<160x128xbf16, #tpu.memory_space<vmem>>, vector<160x128xbf16>
      tpu.vector_store %arg8[%c0_14, %c0_15], %15 {strides = array<i32>} : memref<160x128xbf16, #tpu.memory_space<vmem>>, vector<160x128xbf16>,
      %c0_16 = arith.constant 0 : index
      %c0_17 = arith.constant 0 : index
      %17 = vector.load %arg4[%c0_16, %c0_17] : memref<64x160xbf16, #tpu.memory_space<vmem>>, vector<64x160xbf16>
      %c0_18 = arith.constant 0 : index
      %c0_19 = arith.constant 0 : index
      %18 = vector.load %arg2[%c0_18, %c0_19] : memref<160x128xbf16, #tpu.memory_space<vmem>>, vector<160x128xbf16>
      %cst_20 = arith.constant dense<0.000000e+00> : vector<64x128xf32>
      %19 = tpu.matmul %17, %18, %cst_20 {dimension_numbers = #tpu.dot_dimension_numbers<[1], [0], [0], [1], [0, 0, 1, 1], [], []>} : vector<64x160xbf16>, vector<160x128xbf16>, vector<64x128xf32> -> vector<64x128xf32>
      %c0_21 = arith.constant 0 : index
      %c0_22 = arith.constant 0 : index
      %20 = vector.load %arg9[%c0_21, %c0_22] : memref<64x128xf32, #tpu.memory_space<vmem>>, vector<64x128xf32>
      tpu.vector_store %arg9[%c0_21, %c0_22], %19 {strides = array<i32>} : memref<64x128xf32, #tpu.memory_space<vmem>>, vector<64x128xf32>,
    } else {
    }
    %c0 = arith.constant 0 : index
    %c0_1 = arith.constant 0 : index
    %3 = vector.load %arg5[%c0, %c0_1] : memref<80x160xbf16, #tpu.memory_space<vmem>>, vector<80x160xbf16>
    %c0_2 = arith.constant 0 : index
    %c0_3 = arith.constant 0 : index
    %4 = vector.load %arg8[%c0_2, %c0_3] : memref<160x128xbf16, #tpu.memory_space<vmem>>, vector<160x128xbf16>
    %cst = arith.constant dense<0.000000e+00> : vector<80x128xf32>
    %5 = tpu.matmul %3, %4, %cst {dimension_numbers = #tpu.dot_dimension_numbers<[1], [0], [0], [1], [0, 0, 1, 1], [], []>} : vector<80x160xbf16>, vector<160x128xbf16>, vector<80x128xf32> -> vector<80x128xf32>
    %6 = vector.extract_strided_slice %5 {offsets = [64, 0], sizes = [1, 128], strides = [1, 1]} : vector<80x128xf32> to vector<1x128xf32>
    %c0_4 = arith.constant 0 : index
    %c0_5 = arith.constant 0 : index
    %c0_6 = arith.constant 0 : index
    %7 = vector.load %arg6[%c0_4, %c0_5, %c0_6] : memref<1x1x128xf32, #tpu.memory_space<vmem>>, vector<1x1x128xf32>
    %8 = vector.shape_cast %7 : vector<1x1x128xf32> to vector<1x128xf32>
    %9 = vector.shape_cast %6 : vector<1x128xf32> to vector<1x1x128xf32>
    tpu.vector_store %arg6[%c0_4, %c0_5, %c0_6], %9 {strides = array<i32>} : memref<1x1x128xf32, #tpu.memory_space<vmem>>, vector<1x1x128xf32>,
    %c4_i32 = arith.constant 4 : i32
    %10 = arith.cmpi slt, %arg0, %c4_i32 : i32
    %11 = arith.extui %10 : i1 to i32
    %c0_i32_7 = arith.constant 0 : i32
    %12 = arith.cmpi ne, %11, %c0_i32_7 : i32
    scf.if %12 {
      %13 = vector.extract_strided_slice %5 {offsets = [0, 0], sizes = [64, 128], strides = [1, 1]} : vector<80x128xf32> to vector<64x128xf32>
      %c0_8 = arith.constant 0 : index
      %c0_9 = arith.constant 0 : index
      %14 = vector.load %arg9[%c0_8, %c0_9] : memref<64x128xf32, #tpu.memory_space<vmem>>, vector<64x128xf32>
      %15 = arith.addf %13, %14 : vector<64x128xf32>
      %c0_10 = arith.constant 0 : index
      %c0_11 = arith.constant 0 : index
      %16 = vector.load %arg7[%c0_10, %c0_11] : memref<16x128xf32, #tpu.memory_space<vmem>>, vector<16x128xf32>
      %17 = vector.extract_strided_slice %15 {offsets = [0, 0], sizes = [16, 128], strides = [1, 1]} : vector<64x128xf32> to vector<16x128xf32>
      %18 = arith.negf %17 : vector<16x128xf32>
      %19 = math.exp %18 : vector<16x128xf32>
      %cst_12 = arith.constant 1.000000e+00 : f32
      %20 = vector.broadcast %cst_12 : f32 to vector<16x128xf32>
      %21 = arith.addf %20, %19 : vector<16x128xf32>
      %22 = arith.divf %20, %21 : vector<16x128xf32>
      %23 = vector.extract_strided_slice %15 {offsets = [16, 0], sizes = [16, 128], strides = [1, 1]} : vector<64x128xf32> to vector<16x128xf32>
      %24 = arith.negf %23 : vector<16x128xf32>
      %25 = math.exp %24 : vector<16x128xf32>
      %cst_13 = arith.constant 1.000000e+00 : f32
      %26 = vector.broadcast %cst_13 : f32 to vector<16x128xf32>
      %27 = arith.addf %26, %25 : vector<16x128xf32>
      %28 = arith.divf %26, %27 : vector<16x128xf32>
      %29 = vector.extract_strided_slice %15 {offsets = [32, 0], sizes = [16, 128], strides = [1, 1]} : vector<64x128xf32> to vector<16x128xf32>
      %30 = arith.negf %29 : vector<16x128xf32>
      %31 = math.exp %30 : vector<16x128xf32>
      %cst_14 = arith.constant 1.000000e+00 : f32
      %32 = vector.broadcast %cst_14 : f32 to vector<16x128xf32>
      %33 = arith.addf %32, %31 : vector<16x128xf32>
      %34 = arith.divf %32, %33 : vector<16x128xf32>
      %35 = vector.extract_strided_slice %15 {offsets = [48, 0], sizes = [16, 128], strides = [1, 1]} : vector<64x128xf32> to vector<16x128xf32>
      %36 = math.tanh %35 : vector<16x128xf32>
      %37 = arith.mulf %28, %16 : vector<16x128xf32>
      %38 = arith.mulf %22, %36 : vector<16x128xf32>
      %39 = arith.addf %37, %38 : vector<16x128xf32>
      %40 = math.tanh %39 : vector<16x128xf32>
      %41 = arith.mulf %34, %40 : vector<16x128xf32>
      %c0_15 = arith.constant 0 : index
      %c0_16 = arith.constant 0 : index
      %42 = vector.load %arg7[%c0_15, %c0_16] : memref<16x128xf32, #tpu.memory_space<vmem>>, vector<16x128xf32>
      tpu.vector_store %arg7[%c0_15, %c0_16], %39 {strides = array<i32>} : memref<16x128xf32, #tpu.memory_space<vmem>>, vector<16x128xf32>,
      %c9_i32 = arith.constant 9 : i32
      %43 = tpu.dynamic_rotate %41 by %c9_i32 dim 1 : vector<16x128xf32>, i32 -> vector<16x128xf32>
      %c0_17 = arith.constant 0 : index
      %c0_18 = arith.constant 0 : index
      %c0_19 = arith.constant 0 : index
      %44 = vector.load %arg1[%c0_17, %c0_18, %c0_19] : memref<9x1x128xf32, #tpu.memory_space<vmem>>, vector<1x1x128xf32>
      %45 = vector.shape_cast %44 : vector<1x1x128xf32> to vector<1x128xf32>
      %46 = vector.broadcast %45 : vector<1x128xf32> to vector<16x128xf32>
      %47 = arith.mulf %43, %46 : vector<16x128xf32>
      %48 = arith.truncf %47 : vector<16x128xf32> to vector<16x128xbf16>
      %c0_20 = arith.constant 0 : index
      %c0_21 = arith.constant 0 : index
      %49 = vector.load %arg8[%c0_20, %c0_21] : memref<160x128xbf16, #tpu.memory_space<vmem>>, vector<16x128xbf16>
      tpu.vector_store %arg8[%c0_20, %c0_21], %48 {strides = array<i32>} : memref<160x128xbf16, #tpu.memory_space<vmem>>, vector<16x128xbf16>,
      %c8_i32 = arith.constant 8 : i32
      %50 = tpu.dynamic_rotate %41 by %c8_i32 dim 1 : vector<16x128xf32>, i32 -> vector<16x128xf32>
      %c1 = arith.constant 1 : index
      %c0_22 = arith.constant 0 : index
      %c0_23 = arith.constant 0 : index
      %51 = vector.load %arg1[%c1, %c0_22, %c0_23] : memref<9x1x128xf32, #tpu.memory_space<vmem>>, vector<1x1x128xf32>
      %52 = vector.shape_cast %51 : vector<1x1x128xf32> to vector<1x128xf32>
      %53 = vector.broadcast %52 : vector<1x128xf32> to vector<16x128xf32>
      %54 = arith.mulf %50, %53 : vector<16x128xf32>
      %55 = arith.truncf %54 : vector<16x128xf32> to vector<16x128xbf16>
      %c16 = arith.constant 16 : index
      %c0_24 = arith.constant 0 : index
      %56 = vector.load %arg8[%c16, %c0_24] : memref<160x128xbf16, #tpu.memory_space<vmem>>, vector<16x128xbf16>
      tpu.vector_store %arg8[%c16, %c0_24], %55 {strides = array<i32>} : memref<160x128xbf16, #tpu.memory_space<vmem>>, vector<16x128xbf16>,
      %c7_i32 = arith.constant 7 : i32
      %57 = tpu.dynamic_rotate %41 by %c7_i32 dim 1 : vector<16x128xf32>, i32 -> vector<16x128xf32>
      %c2 = arith.constant 2 : index
      %c0_25 = arith.constant 0 : index
      %c0_26 = arith.constant 0 : index
      %58 = vector.load %arg1[%c2, %c0_25, %c0_26] : memref<9x1x128xf32, #tpu.memory_space<vmem>>, vector<1x1x128xf32>
      %59 = vector.shape_cast %58 : vector<1x1x128xf32> to vector<1x128xf32>
      %60 = vector.broadcast %59 : vector<1x128xf32> to vector<16x128xf32>
      %61 = arith.mulf %57, %60 : vector<16x128xf32>
      %62 = arith.truncf %61 : vector<16x128xf32> to vector<16x128xbf16>
      %c32 = arith.constant 32 : index
      %c0_27 = arith.constant 0 : index
      %63 = vector.load %arg8[%c32, %c0_27] : memref<160x128xbf16, #tpu.memory_space<vmem>>, vector<16x128xbf16>
      tpu.vector_store %arg8[%c32, %c0_27], %62 {strides = array<i32>} : memref<160x128xbf16, #tpu.memory_space<vmem>>, vector<16x128xbf16>,
      %c1_i32 = arith.constant 1 : i32
      %64 = tpu.dynamic_rotate %41 by %c1_i32 dim 1 : vector<16x128xf32>, i32 -> vector<16x128xf32>
      %c3 = arith.constant 3 : index
      %c0_28 = arith.constant 0 : index
      %c0_29 = arith.constant 0 : index
      %65 = vector.load %arg1[%c3, %c0_28, %c0_29] : memref<9x1x128xf32, #tpu.memory_space<vmem>>, vector<1x1x128xf32>
      %66 = vector.shape_cast %65 : vector<1x1x128xf32> to vector<1x128xf32>
      %67 = vector.broadcast %66 : vector<1x128xf32> to vector<16x128xf32>
      %68 = arith.mulf %64, %67 : vector<16x128xf32>
      %69 = arith.truncf %68 : vector<16x128xf32> to vector<16x128xbf16>
      %c48 = arith.constant 48 : index
      %c0_30 = arith.constant 0 : index
      %70 = vector.load %arg8[%c48, %c0_30] : memref<160x128xbf16, #tpu.memory_space<vmem>>, vector<16x128xbf16>
      tpu.vector_store %arg8[%c48, %c0_30], %69 {strides = array<i32>} : memref<160x128xbf16, #tpu.memory_space<vmem>>, vector<16x128xbf16>,
      %71 = arith.truncf %41 : vector<16x128xf32> to vector<16x128xbf16>
      %c64 = arith.constant 64 : index
      %c0_31 = arith.constant 0 : index
      %72 = vector.load %arg8[%c64, %c0_31] : memref<160x128xbf16, #tpu.memory_space<vmem>>, vector<16x128xbf16>
      tpu.vector_store %arg8[%c64, %c0_31], %71 {strides = array<i32>} : memref<160x128xbf16, #tpu.memory_space<vmem>>, vector<16x128xbf16>,
      %c127_i32 = arith.constant 127 : i32
      %73 = tpu.dynamic_rotate %41 by %c127_i32 dim 1 : vector<16x128xf32>, i32 -> vector<16x128xf32>
      %c5 = arith.constant 5 : index
      %c0_32 = arith.constant 0 : index
      %c0_33 = arith.constant 0 : index
      %74 = vector.load %arg1[%c5, %c0_32, %c0_33] : memref<9x1x128xf32, #tpu.memory_space<vmem>>, vector<1x1x128xf32>
      %75 = vector.shape_cast %74 : vector<1x1x128xf32> to vector<1x128xf32>
      %76 = vector.broadcast %75 : vector<1x128xf32> to vector<16x128xf32>
      %77 = arith.mulf %73, %76 : vector<16x128xf32>
      %78 = arith.truncf %77 : vector<16x128xf32> to vector<16x128xbf16>
      %c80 = arith.constant 80 : index
      %c0_34 = arith.constant 0 : index
      %79 = vector.load %arg8[%c80, %c0_34] : memref<160x128xbf16, #tpu.memory_space<vmem>>, vector<16x128xbf16>
      tpu.vector_store %arg8[%c80, %c0_34], %78 {strides = array<i32>} : memref<160x128xbf16, #tpu.memory_space<vmem>>, vector<16x128xbf16>,
      %c121_i32 = arith.constant 121 : i32
      %80 = tpu.dynamic_rotate %41 by %c121_i32 dim 1 : vector<16x128xf32>, i32 -> vector<16x128xf32>
      %c6 = arith.constant 6 : index
      %c0_35 = arith.constant 0 : index
      %c0_36 = arith.constant 0 : index
      %81 = vector.load %arg1[%c6, %c0_35, %c0_36] : memref<9x1x128xf32, #tpu.memory_space<vmem>>, vector<1x1x128xf32>
      %82 = vector.shape_cast %81 : vector<1x1x128xf32> to vector<1x128xf32>
      %83 = vector.broadcast %82 : vector<1x128xf32> to vector<16x128xf32>
      %84 = arith.mulf %80, %83 : vector<16x128xf32>
      %85 = arith.truncf %84 : vector<16x128xf32> to vector<16x128xbf16>
      %c96 = arith.constant 96 : index
      %c0_37 = arith.constant 0 : index
      %86 = vector.load %arg8[%c96, %c0_37] : memref<160x128xbf16, #tpu.memory_space<vmem>>, vector<16x128xbf16>
      tpu.vector_store %arg8[%c96, %c0_37], %85 {strides = array<i32>} : memref<160x128xbf16, #tpu.memory_space<vmem>>, vector<16x128xbf16>,
      %c120_i32 = arith.constant 120 : i32
      %87 = tpu.dynamic_rotate %41 by %c120_i32 dim 1 : vector<16x128xf32>, i32 -> vector<16x128xf32>
      %c7 = arith.constant 7 : index
      %c0_38 = arith.constant 0 : index
      %c0_39 = arith.constant 0 : index
      %88 = vector.load %arg1[%c7, %c0_38, %c0_39] : memref<9x1x128xf32, #tpu.memory_space<vmem>>, vector<1x1x128xf32>
      %89 = vector.shape_cast %88 : vector<1x1x128xf32> to vector<1x128xf32>
      %90 = vector.broadcast %89 : vector<1x128xf32> to vector<16x128xf32>
      %91 = arith.mulf %87, %90 : vector<16x128xf32>
      %92 = arith.truncf %91 : vector<16x128xf32> to vector<16x128xbf16>
      %c112 = arith.constant 112 : index
      %c0_40 = arith.constant 0 : index
      %93 = vector.load %arg8[%c112, %c0_40] : memref<160x128xbf16, #tpu.memory_space<vmem>>, vector<16x128xbf16>
      tpu.vector_store %arg8[%c112, %c0_40], %92 {strides = array<i32>} : memref<160x128xbf16, #tpu.memory_space<vmem>>, vector<16x128xbf16>,
      %c119_i32 = arith.constant 119 : i32
      %94 = tpu.dynamic_rotate %41 by %c119_i32 dim 1 : vector<16x128xf32>, i32 -> vector<16x128xf32>
      %c8 = arith.constant 8 : index
      %c0_41 = arith.constant 0 : index
      %c0_42 = arith.constant 0 : index
      %95 = vector.load %arg1[%c8, %c0_41, %c0_42] : memref<9x1x128xf32, #tpu.memory_space<vmem>>, vector<1x1x128xf32>
      %96 = vector.shape_cast %95 : vector<1x1x128xf32> to vector<1x128xf32>
      %97 = vector.broadcast %96 : vector<1x128xf32> to vector<16x128xf32>
      %98 = arith.mulf %94, %97 : vector<16x128xf32>
      %99 = arith.truncf %98 : vector<16x128xf32> to vector<16x128xbf16>
      %c128 = arith.constant 128 : index
      %c0_43 = arith.constant 0 : index
      %100 = vector.load %arg8[%c128, %c0_43] : memref<160x128xbf16, #tpu.memory_space<vmem>>, vector<16x128xbf16>
      tpu.vector_store %arg8[%c128, %c0_43], %99 {strides = array<i32>} : memref<160x128xbf16, #tpu.memory_space<vmem>>, vector<16x128xbf16>,
    } else {
    }
    return
  }
  func.func @transform_0(%arg0: i32) -> (i32, i32, i32) {
    %c0_i32 = arith.constant 0 : i32
    %c0_i32_0 = arith.constant 0 : i32
    %c0_i32_1 = arith.constant 0 : i32
    %c0_i32_2 = arith.constant 0 : i32
    return %c0_i32, %c0_i32_0, %c0_i32_1 : i32, i32, i32
  }
  func.func @transform_1(%arg0: i32) -> (i32, i32) {
    %c0_i32 = arith.constant 0 : i32
    %c0_i32_0 = arith.constant 0 : i32
    %c0_i32_1 = arith.constant 0 : i32
    return %c0_i32, %c0_i32_0 : i32, i32
  }
  func.func @transform_2(%arg0: i32) -> (i32, i32) {
    %c0_i32 = arith.constant 0 : i32
    %c0_i32_0 = arith.constant 0 : i32
    %c0_i32_1 = arith.constant 0 : i32
    return %c0_i32, %c0_i32_0 : i32, i32
  }
  func.func @transform_3(%arg0: i32) -> (i32, i32) {
    %c0_i32 = arith.constant 0 : i32
    %c0_i32_0 = arith.constant 0 : i32
    %c0_i32_1 = arith.constant 0 : i32
    return %c0_i32, %c0_i32_0 : i32, i32
  }
  func.func @transform_4(%arg0: i32) -> (i32, i32) {
    %c0_i32 = arith.constant 0 : i32
    %c0_i32_0 = arith.constant 0 : i32
    %c0_i32_1 = arith.constant 0 : i32
    return %c0_i32, %c0_i32_0 : i32, i32
  }
  func.func @transform_5(%arg0: i32) -> (i32, i32, i32) {
    %c0_i32 = arith.constant 0 : i32
    %c0_i32_0 = arith.constant 0 : i32
    %c0_i32_1 = arith.constant 0 : i32
    return %arg0, %c0_i32, %c0_i32_0 : i32, i32, i32
  }
}

</mosaic_0001>

<bundles_post_ra>
// kernel: tile.38
= control target key start
LH: loop header
LB: loop body
LE: loop exit
PB: predicated region body
PF: predicated region fallthrough
CT: control target
= control target key end

     0   :  { %s22_s0 = inlined_call_operand.vmem [shape: f32[64], index: 0, kind: input, shape index: {}]   ;;  %s23_s1 = inlined_call_operand.vmem [shape: f32[2,64], index: 1, kind: output, shape index: {}]  }
   0x1   :  { %v4_v0 = vld [vmem:[%s22_s0] ss:$0 sm:$0xff] }
   0x2   :  { %5 = vst [vmem:[%s23_s1] sm:$0x3] %v4_v0 }

// kernel: tile.63
= control target key start
LH: loop header
LB: loop body
LE: loop exit
PB: predicated region body
PF: predicated region fallthrough
CT: control target
= control target key end

     0   :  { %vm7_vm0 = vcmask 523264   ;;  %vm13_vm1 = vcmask 1048064   ;;  %s39_s0 = inlined_call_operand.vmem [shape: f32[2,64], index: 0, kind: input, shape index: {}]   ;;  %s40_s1 = inlined_call_operand.vmem [shape: f32[1,1,128], index: 1, kind: output, shape index: {}]  }
   0x1   :  { %v4_v0 = vld [vmem:[%s39_s0] sm:$0x3]  ;;  %s22_s0 = smov 64  }
   0x2   :  { %5 = vst [vmem:[#allocation1] sm:$0x3] %v4_v0 }
   0x9   :  { %v10_v1 = vld [vmem:[#allocation1 + $0x1] sm:$0x1]   ;;  %v6_v2 = vld [vmem:[#allocation1] sm:$0x1]  }
   0xa   :  { %11 = vrot.lane.b32.xlu0 %v10_v1, %s22_s0  ;;  %8 = vst.msk [vmem:[#allocation0] sm:$0x1] %vm7_vm0, %v6_v2  }
  0x7c   :  { %v12_v3 = vpop.permute.xlu0 %11  }
  0x7d   :  { %14 = vst.msk [vmem:[#allocation0] sm:$0x1] %vm13_vm1, %v12_v3  }
  0x84   :  { %v18_v4 = vld [vmem:[#allocation0] sm:$0x1] }
  0x85   :  { %20 = vst [vmem:[%s40_s1] sm:$0x1] %v18_v4 }

// kernel: convlstm_autoencoder_forward.2
= control target key start
LH: loop header
LB: loop body
LE: loop exit
PB: predicated region body
PF: predicated region fallthrough
CT: control target
= control target key end

     0   :  { %s985_s15 = smov 0   ;;  %s1190_s0 = inlined_call_operand.vmem [shape: f32[9,1,128], index: 0, kind: input, shape index: {}]   ;;  %s1191_s1 = inlined_call_operand.vmem [shape: bf16[4,16,128], index: 1, kind: input, shape index: {}]   ;;  %s1192_s2 = inlined_call_operand.vmem [shape: bf16[64,160], index: 2, kind: input, shape index: {}]   ;;  %s1193_s3 = inlined_call_operand.vmem [shape: bf16[160,128], index: 3, kind: output, shape index: {0}]   ;;  %s1194_s4 = inlined_call_operand.vmem [shape: f32[16,128], index: 4, kind: output, shape index: {1}]  }
   0x1 LB: > { %s991_s16 = sadd.s32 4294967295, %s947_s15   ;;  %p708_p0 = scmp.ge.s32.totalorder %s947_s15, 1  ;;  %s947_s15 = sphi %s985_s15, %s15_s15  }
   0x2   : > { %p155_p1 = scmp.lt.s32.totalorder %s947_s15, 5 }
   0x4   : > { %p156_p2 = pnand %p708_p0, %p155_p1 }
   0x5   : > { %p176_p3 = scmp.lt.s32.totalorder (!%p156_p2), %s991_s16, 3  ;;  %p711_p4 = scmp.ne.s32.totalorder (!%p156_p2), %s991_s16, 0 }
   0x6   : > { %159 = sbr.rel (%p156_p2) target bundleno = 478 (0x1de), region = 32 }
   0xd   : > { %s177_s17 = scalar_select %p176_p3, %s991_s16, 3 }
   0xe   : > { %185 = sbr.rel (%p711_p4) target bundleno = 25 (0x19), region = 36  ;;  %v949_v0 = vmov (!%p711_p4), 0.0   ;;  %v950_v1 = vmov (!%p711_p4), 0  }
   0xf   : > { %s776_s18 = sshll.u32 %s177_s17, 3  ;;  %186 = vst [vmem:[#allocation2] sm:$0xff] (!%p711_p4), %v949_v0  ;;  %187 = vst [vmem:[#allocation2 + $0x8] sm:$0xff] (!%p711_p4), %v949_v0 }
  0x10   : > { %s1000_s21 = scalar_lea.vmem %s1191_s1, %s776_s18  ;;  %188 = vst [vmem:[%s1193_s3] sm:$0xf] (!%p711_p4), %v950_v1  ;;  %189 = vst [vmem:[%s1193_s3 + $0x4] sm:$0xf] (!%p711_p4), %v950_v1 }
  0x11   : > { %190 = vst [vmem:[%s1193_s3 + $0x8] sm:$0xf] (!%p711_p4), %v950_v1  ;;  %191 = vst [vmem:[%s1193_s3 + $0xc] sm:$0xf] (!%p711_p4), %v950_v1 }
  0x12   : > { %192 = vst [vmem:[%s1193_s3 + $0x10] sm:$0xf] (!%p711_p4), %v950_v1  ;;  %193 = vst [vmem:[%s1193_s3 + $0x14] sm:$0xf] (!%p711_p4), %v950_v1 }
  0x13   : > { %194 = vst [vmem:[%s1193_s3 + $0x18] sm:$0xf] (!%p711_p4), %v950_v1  ;;  %195 = vst [vmem:[%s1193_s3 + $0x1c] sm:$0xf] (!%p711_p4), %v950_v1 }
  0x14   : > { %196 = vst [vmem:[%s1193_s3 + $0x20] sm:$0xf] (!%p711_p4), %v950_v1  ;;  %197 = vst [vmem:[%s1193_s3 + $0x24] sm:$0xf] (!%p711_p4), %v950_v1 }
  0x15   : > { %198 = vst [vmem:[%s1193_s3 + $0x28] sm:$0xf] %v950_v1  ;;  %199 = vst [vmem:[%s1193_s3 + $0x2c] sm:$0xf] %v950_v1 }
  0x16   : > { %200 = vst [vmem:[%s1193_s3 + $0x30] sm:$0xf] %v950_v1  ;;  %201 = vst [vmem:[%s1193_s3 + $0x34] sm:$0xf] %v950_v1 }
  0x17   : > { %202 = vst [vmem:[%s1193_s3 + $0x38] sm:$0xf] %v950_v1  ;;  %203 = vst [vmem:[%s1193_s3 + $0x3c] sm:$0xf] %v950_v1 }
  0x18   : > { %204 = vst [vmem:[%s1193_s3 + $0x40] sm:$0xf] %v950_v1  ;;  %205 = vst [vmem:[%s1193_s3 + $0x44] sm:$0xf] %v950_v1 }
  0x19 PF: > { %v951_v3 = vmov 0   ;;  %v206_v6 = vld [vmem:[%s1000_s21] sm:$0xff]   ;;  %vm334_vm0 = vcmask 261120   ;;  %v903_v18 = vld [vmem:[%s1192_s2 + $0x14] ss:$8 sps:$4 sm:$0xff]   ;;  %s952_s21 = smov 8  }
  0x1a   : > { %347 = vmatprep.subr.bf16.mxu0 %v951_v3  ;;  %848 = vmatprep.subr.bf16.mxu1 %v951_v3  ;;  %208 = vst [vmem:[%s1193_s3 + $0x48] sm:$0xff] %v206_v6   ;;  %v899_v8 = vld [vmem:[%s1192_s2 + $0x4] ss:$8 sps:$4 sm:$0xff]   ;;  %v897_v16 = vld [vmem:[%s1192_s2] ss:$8 sps:$4 sm:$0xff]   ;;  %s953_s26 = smov 9  }
  0x1b   : > { %v887_v2 = vld [vmem:[%s1193_s3] sm:$0xff]   ;;  %730 = vmatprep.mubr.msk.bf16.mxu0 %vm334_vm0, %v899_v8  ;;  %v906_v19 = vld [vmem:[%s1192_s2 + $0x34] ss:$8 sps:$4 sm:$0xff]   ;;  %v905_v20 = vld [vmem:[%s1192_s2 + $0x10] ss:$8 sps:$4 sm:$0xff]   ;;  %s954_s29 = smov 7  }
  0x1c   : > { %348 = vmatpush1.bf16.msra.mxu0 %v887_v2  ;;  %v888_v4 = vld [vmem:[%s1193_s3 + $0x8] sm:$0xff]   ;;  %858 = vmatpush1.bf16.msra.mxu1 %v887_v2  ;;  %v908_v21 = vld [vmem:[%s1192_s2 + $0x30] ss:$8 sps:$4 sm:$0xff]   ;;  %v412_v59 = vld [vmem:[#allocation2] sm:$0xff]  ;;  %s955_s30 = smov 1   ;;  %s956_s5 = smov 127  }
  0x1d   : > { %349 = vmatprep.subr.bf16.mxu0 %v951_v3  ;;  %849 = vmatprep.subr.bf16.mxu1 %v951_v3  ;;  %v889_v5 = vld [vmem:[%s1193_s3 + $0x10] sm:$0xff]   ;;  %v902_v9 = vld [vmem:[%s1192_s2 + $0x24] ss:$8 sps:$4 sm:$0xff]   ;;  %v900_v17 = vld [vmem:[%s1192_s2 + $0x20] ss:$8 sps:$4 sm:$0xff]   ;;  %s957_s6 = smov 121  }
  0x1e   : > { %v890_v7 = vld [vmem:[%s1193_s3 + $0x18] sm:$0xff]   ;;  %732 = vmatprep.mubr.msk.bf16.mxu1 %vm334_vm0, %v902_v9  ;;  %v893_v12 = vld [vmem:[%s1193_s3 + $0x30] sm:$0xff]   ;;  %v413_v62 = vld [vmem:[#allocation2 + $0x8] sm:$0xff]  ;;  %s958_s7 = smov 120   ;;  %s959_s8 = smov 119  }
  0x1f   : > { %v891_v10 = vld [vmem:[%s1193_s3 + $0x20] sm:$0xff]   ;;  %v894_v13 = vld [vmem:[%s1193_s3 + $0x38] sm:$0xff]   ;;  %p773_p5 = scmp.ne.s32.totalorder %s991_s16, 3 }
  0x20   : > { %350 = vmatpush1.bf16.msra.mxu0 %v888_v4  ;;  %859 = vmatpush1.bf16.msra.mxu1 %v888_v4  ;;  %v892_v11 = vld [vmem:[%s1193_s3 + $0x28] sm:$0xff]   ;;  %v895_v14 = vld [vmem:[%s1193_s3 + $0x40] sm:$0xff]  }
  0x21   : > { %351 = vmatprep.subr.bf16.mxu0 %v951_v3  ;;  %850 = vmatprep.subr.bf16.mxu1 %v951_v3  ;;  %v896_v15 = vld [vmem:[%s1193_s3 + $0x48] sm:$0xff]  }
  0x24   : > { %352 = vmatpush1.bf16.msra.mxu0 %v889_v5  ;;  %860 = vmatpush1.bf16.msra.mxu1 %v889_v5 }
  0x25   : > { %353 = vmatprep.subr.bf16.mxu0 %v951_v3  ;;  %851 = vmatprep.subr.bf16.mxu1 %v951_v3 }
  0x28   : > { %354 = vmatpush1.bf16.msra.mxu0 %v890_v7  ;;  %861 = vmatpush1.bf16.msra.mxu1 %v890_v7 }
  0x29   : > { %355 = vmatprep.subr.bf16.mxu0 %v951_v3  ;;  %852 = vmatprep.subr.bf16.mxu1 %v951_v3 }
  0x2c   : > { %356 = vmatpush1.bf16.msra.mxu0 %v891_v10  ;;  %862 = vmatpush1.bf16.msra.mxu1 %v891_v10 }
  0x2d   : > { %357 = vmatprep.subr.bf16.mxu0 %v951_v3  ;;  %853 = vmatprep.subr.bf16.mxu1 %v951_v3 }
  0x30   : > { %358 = vmatpush1.bf16.msra.mxu0 %v892_v11  ;;  %863 = vmatpush1.bf16.msra.mxu1 %v892_v11 }
  0x31   : > { %359 = vmatprep.subr.bf16.mxu0 %v951_v3  ;;  %854 = vmatprep.subr.bf16.mxu1 %v951_v3 }
  0x34   : > { %360 = vmatpush1.bf16.msra.mxu0 %v893_v12  ;;  %864 = vmatpush1.bf16.msra.mxu1 %v893_v12 }
  0x35   : > { %361 = vmatprep.subr.bf16.mxu0 %v951_v3  ;;  %855 = vmatprep.subr.bf16.mxu1 %v951_v3 }
  0x38   : > { %362 = vmatpush1.bf16.msra.mxu0 %v894_v13  ;;  %865 = vmatpush1.bf16.msra.mxu1 %v894_v13 }
  0x39   : > { %363 = vmatprep.subr.bf16.mxu0 %v951_v3  ;;  %856 = vmatprep.subr.bf16.mxu1 %v951_v3 }
  0x3c   : > { %364 = vmatpush1.bf16.msra.mxu0 %v895_v14  ;;  %866 = vmatpush1.bf16.msra.mxu1 %v895_v14 }
  0x3d   : > { %365 = vmatprep.subr.bf16.mxu0 %v951_v3  ;;  %857 = vmatprep.subr.bf16.mxu1 %v951_v3 }
  0x40   : > { %366 = vmatpush1.bf16.msra.mxu0 %v896_v15  ;;  %867 = vmatpush1.bf16.msra.mxu1 %v896_v15  ;;  %v744_v15 = vld [vmem:[%s1190_s0 + $0x1] ss:$0 sm:$0xff] }
  0x43   : > { %380 = vmatmul.mubr.bf16.vlgmr.msra.gmra.mrb[0].mxu0 %v897_v16  ;;  %396 = vmatmul.mubr.bf16.vlgmr.msra.gmra.mrb[0].mxu1 %v900_v17 }
  0x44   : > { %731 = vmatprep.mubr.msk.bf16.mxu0 %vm334_vm0, %v903_v18  ;;  %733 = vmatprep.mubr.msk.bf16.mxu1 %vm334_vm0, %v906_v19 }
  0x4b   : > { %388 = vmatmul.mubr.bf16.gmra.mrb[4].mxu0 %v905_v20  ;;  %404 = vmatmul.mubr.bf16.gmra.mrb[4].mxu1 %v908_v21  ;;  %v748_v20 = vld [vmem:[%s1190_s0 + $0x2] ss:$0 sm:$0xff] }
 0x116   : > { %v381_v22 = vpop.f32.mrb[0].mxu0  ;;  %v397_v23 = vpop.f32.mrb[0].mxu1 }
 0x117   : > { %v734_v24 = vmul.f32 -1.442695, %v381_v22  ;;  %v383_v25 = vpop.f32.mrb[1].mxu0  ;;  %v399_v26 = vpop.f32.mrb[1].mxu1  ;;  %v738_v46 = vmul.f32 -1.442695, %v397_v23 }
 0x118   : > { %v384_v27 = vpop.f32.mrb[2].mxu0  ;;  %v400_v28 = vpop.f32.mrb[2].mxu1  ;;  %v752_v26 = vld [vmem:[%s1190_s0 + $0x3] ss:$0 sm:$0xff] }
 0x119   : > { %909 = vpow2.f32 %v734_v24  ;;  %v735_v29 = vmul.f32 -1.442695, %v384_v27  ;;  %v386_v30 = vpop.f32.mrb[3].mxu0  ;;  %v402_v31 = vpop.f32.mrb[3].mxu1  ;;  %v739_v47 = vmul.f32 -1.442695, %v400_v28 }
 0x11b   : > { %911 = vpow2.f32 %v735_v29 }
 0x11e   : > { %v389_v32 = vpop.f32.mrb[4].mxu0  ;;  %v405_v33 = vpop.f32.mrb[4].mxu1 }
 0x11f   : > { %v736_v34 = vmul.f32 -1.442695, %v389_v32  ;;  %v391_v35 = vpop.f32.mrb[5].mxu0  ;;  %v407_v36 = vpop.f32.mrb[5].mxu1  ;;  %v758_v32 = vld [vmem:[%s1190_s0 + $0x5] ss:$0 sm:$0xff] }
 0x120   : > { %v392_v37 = vpop.f32.mrb[6].mxu0  ;;  %v408_v38 = vpop.f32.mrb[6].mxu1 }
 0x121   : > { %913 = vpow2.f32 %v736_v34  ;;  %v737_v39 = vmul.f32 -1.442695, %v392_v37  ;;  %v394_v40 = vpop.f32.mrb[7].mxu0  ;;  %v410_v41 = vpop.f32.mrb[7].mxu1 }
 0x123   : > { %v910_v42 = vpop.eup %909  ;;  %915 = vpow2.f32 %v737_v39 }
 0x124   : > { %v420_v43 = vadd.f32 1.0, %v910_v42  ;;  %917 = vtanh.f32 %v405_v33 }
 0x125   : > { %v912_v44 = vpop.eup %911  ;;  %919 = vtanh.f32 %v408_v38  ;;  %v762_v38 = vld [vmem:[%s1190_s0 + $0x6] ss:$0 sm:$0xff] }
 0x126   : > { %921 = vrcp.f32 %v420_v43  ;;  %v421_v45 = vadd.f32 1.0, %v912_v44  ;;  %v740_v44 = vld [vmem:[%s1190_s0] ss:$0 sm:$0xff] }
 0x128   : > { %923 = vrcp.f32 %v421_v45  ;;  %v766_v45 = vld [vmem:[%s1190_s0 + $0x7] ss:$0 sm:$0xff] }
 0x129   : > { %925 = vpow2.f32 %v738_v46 }
 0x12a   : > { %927 = vpow2.f32 %v739_v47 }
 0x12b   : > { %v914_v48 = vpop.eup %913 }
 0x12c   : > { %v432_v49 = vadd.f32 1.0, %v914_v48 }
 0x12d   : > { %v916_v50 = vpop.eup %915 }
 0x12e   : > { %v918_v51 = vpop.eup %917  ;;  %929 = vrcp.f32 %v432_v49  ;;  %v433_v52 = vadd.f32 1.0, %v916_v50 }
 0x12f   : > { %v920_v53 = vpop.eup %919 }
 0x130   : > { %v922_v54 = vpop.eup %921  ;;  %931 = vrcp.f32 %v433_v52 }
 0x131   : > { %v454_v55 = vmul.f32 %v922_v54, %v918_v51 }
 0x132   : > { %v924_v56 = vpop.eup %923 }
 0x133   : > { %v455_v57 = vmul.f32 %v924_v56, %v920_v53  ;;  %v926_v58 = vpop.eup %925  ;;  %v770_v53 = vld [vmem:[%s1190_s0 + $0x8] ss:$0 sm:$0xff] }
 0x134   : > { %v928_v60 = vpop.eup %927  ;;  %v444_v63 = vadd.f32 1.0, %v926_v58 }
 0x135   : > { %v445_v2 = vadd.f32 1.0, %v928_v60 }
 0x136   : > { %933 = vrcp.f32 %v444_v63 }
 0x138   : > { %v930_v61 = vpop.eup %929 }
 0x139   : > { %v452_v0 = vmul.f32 %v930_v61, %v412_v59 }
 0x13a   : > { %v932_v1 = vpop.eup %931 }
 0x13b   : > { %v453_v3 = vmul.f32 %v932_v1, %v413_v62  ;;  %v1119_v4 = vadd.f32 %v454_v55, %v452_v0 }
 0x13d   : > { %935 = vtanh.f32 %v1119_v4  ;;  %462 = vst [vmem:[#allocation2] sm:$0xff] %v1119_v4  ;;  %v1123_v5 = vadd.f32 %v455_v57, %v453_v3  ;;  %669 = vst [vmem:[%s1194_s4] sm:$0xff] (!%p773_p5), %v1119_v4 }
 0x13e   : > { %937 = vrcp.f32 %v445_v2 }
 0x13f   : > { %939 = vtanh.f32 %v1123_v5  ;;  %463 = vst [vmem:[#allocation2 + $0x8] sm:$0xff] %v1123_v5  ;;  %670 = vst [vmem:[%s1194_s4 + $0x8] sm:$0xff] (!%p773_p5), %v1123_v5 }
 0x140   : > { %v934_v6 = vpop.eup %933 }
 0x147   : > { %v936_v7 = vpop.eup %935 }
 0x148   : > { %v938_v8 = vpop.eup %937  ;;  %v460_v9 = vmul.f32 %v936_v7, %v934_v6 }
 0x149   : > { %v940_v10 = vpop.eup %939 }
 0x14a   : > { %v461_v11 = vmul.f32 %v940_v10, %v938_v8  ;;  %487 = vrot.lane.b32.xlu1 %v460_v9, %s952_s21  ;;  %464 = vrot.lane.b32.xlu0 %v460_v9, %s953_s26 }
 0x14c   : > { %v818_v12 = vpack.c.bf16 %v461_v11, %v460_v9 }
 0x14e   : > { %843 = vst [vmem:[%s1193_s3 + $0x20] sm:$0xff] %v818_v12   ;;  %511 = vrot.lane.b32.xlu0 %v460_v9, %s954_s29  ;;  %489 = vrot.lane.b32.xlu1 %v461_v11, %s952_s21 }
 0x152   : > { %535 = vrot.lane.b32.xlu0 %v460_v9, %s955_s30  ;;  %513 = vrot.lane.b32.xlu1 %v461_v11, %s954_s29 }
 0x156   : > { %569 = vrot.lane.b32.xlu0 %v460_v9, %s956_s5  ;;  %537 = vrot.lane.b32.xlu1 %v461_v11, %s955_s30 }
 0x15a   : > { %593 = vrot.lane.b32.xlu0 %v460_v9, %s957_s6  ;;  %571 = vrot.lane.b32.xlu1 %v461_v11, %s956_s5 }
 0x15e   : > { %617 = vrot.lane.b32.xlu0 %v460_v9, %s958_s7  ;;  %595 = vrot.lane.b32.xlu1 %v461_v11, %s957_s6 }
 0x162   : > { %619 = vrot.lane.b32.xlu1 %v461_v11, %s958_s7  ;;  %466 = vrot.lane.b32.xlu0 %v461_v11, %s953_s26 }
 0x166   : > { %643 = vrot.lane.b32.xlu1 %v461_v11, %s959_s8  ;;  %641 = vrot.lane.b32.xlu0 %v460_v9, %s959_s8 }
 0x1bc   : > { %v488_v13 = vpop.permute.xlu1 %487  ;;  %v465_v14 = vpop.permute.xlu0 %464 }
 0x1bd   : > { %v499_v18 = vmul.f32 %v744_v15, %v488_v13  ;;  %v475_v49 = vmul.f32 %v740_v44, %v465_v14 }
 0x1c0   : > { %v512_v16 = vpop.permute.xlu0 %511  ;;  %v490_v17 = vpop.permute.xlu1 %489 }
 0x1c1   : > { %v500_v19 = vmul.f32 %v744_v15, %v490_v17  ;;  %v523_v24 = vmul.f32 %v748_v20, %v512_v16 }
 0x1c3   : > { %v803_v21 = vpack.c.bf16 %v500_v19, %v499_v18 }
 0x1c4   : > { %v536_v22 = vpop.permute.xlu0 %535  ;;  %v514_v23 = vpop.permute.xlu1 %513 }
 0x1c5   : > { %840 = vst [vmem:[%s1193_s3 + $0x8] sm:$0xff] %v803_v21   ;;  %v524_v25 = vmul.f32 %v748_v20, %v514_v23  ;;  %v547_v30 = vmul.f32 %v752_v26, %v536_v22 }
 0x1c7   : > { %v808_v27 = vpack.c.bf16 %v524_v25, %v523_v24 }
 0x1c8   : > { %v570_v28 = vpop.permute.xlu0 %569  ;;  %v538_v29 = vpop.permute.xlu1 %537 }
 0x1c9   : > { %841 = vst [vmem:[%s1193_s3 + $0x10] sm:$0xff] %v808_v27   ;;  %v548_v31 = vmul.f32 %v752_v26, %v538_v29  ;;  %v581_v36 = vmul.f32 %v758_v32, %v570_v28 }
 0x1cb   : > { %v813_v33 = vpack.c.bf16 %v548_v31, %v547_v30 }
 0x1cc   : > { %v594_v34 = vpop.permute.xlu0 %593  ;;  %v572_v35 = vpop.permute.xlu1 %571 }
 0x1cd   : > { %842 = vst [vmem:[%s1193_s3 + $0x18] sm:$0xff] %v813_v33   ;;  %v582_v37 = vmul.f32 %v758_v32, %v572_v35  ;;  %v605_v42 = vmul.f32 %v762_v38, %v594_v34 }
 0x1cf   : > { %v823_v39 = vpack.c.bf16 %v582_v37, %v581_v36 }
 0x1d0   : > { %v618_v40 = vpop.permute.xlu0 %617  ;;  %v596_v41 = vpop.permute.xlu1 %595 }
 0x1d1   : > { %844 = vst [vmem:[%s1193_s3 + $0x28] sm:$0xff] %v823_v39   ;;  %v606_v43 = vmul.f32 %v762_v38, %v596_v41  ;;  %v629_v50 = vmul.f32 %v766_v45, %v618_v40 }
 0x1d3   : > { %v828_v46 = vpack.c.bf16 %v606_v43, %v605_v42 }
 0x1d4   : > { %v620_v47 = vpop.permute.xlu1 %619  ;;  %v467_v48 = vpop.permute.xlu0 %466 }
 0x1d5   : > { %845 = vst [vmem:[%s1193_s3 + $0x30] sm:$0xff] %v828_v46   ;;  %v630_v51 = vmul.f32 %v766_v45, %v620_v47  ;;  %v476_v52 = vmul.f32 %v740_v44, %v467_v48 }
 0x1d7   : > { %v833_v54 = vpack.c.bf16 %v630_v51, %v629_v50  ;;  %v798_v55 = vpack.c.bf16 %v476_v52, %v475_v49  ;;  %668 = sbr.rel (%p773_p5) target bundleno = 478 (0x1de), region = 40 }
 0x1d8   : > { %v644_v56 = vpop.permute.xlu1 %643  ;;  %v642_v57 = vpop.permute.xlu0 %641 }
 0x1d9   : > { %846 = vst [vmem:[%s1193_s3 + $0x38] sm:$0xff] %v833_v54   ;;  %799 = vst [vmem:[%s1193_s3] sm:$0xff] %v798_v55   ;;  %v654_v58 = vmul.f32 %v770_v53, %v644_v56  ;;  %v653_v59 = vmul.f32 %v770_v53, %v642_v57 }
 0x1db   : > { %v838_v60 = vpack.c.bf16 %v654_v58, %v653_v59 }
 0x1dd   : > { %847 = vst [vmem:[%s1193_s3 + $0x40] sm:$0xff] %v838_v60  }
 0x1de PF: > { %s15_s15 = sadd.s32 1, %s947_s15  }
 0x1df   : > { %p12_p6 = scmp.ge.s32.totalorder %s15_s15, 6  }
 0x1e1   :  { %14 = sbr.rel (!%p12_p6) target bundleno = 1 (0x1), region = 81 }

// kernel: convlstm_autoencoder_forward.3
= control target key start
LH: loop header
LB: loop body
LE: loop exit
PB: predicated region body
PF: predicated region fallthrough
CT: control target
= control target key end

     0   :  { %s1161_s18 = smov 0   ;;  %s1362_s0 = inlined_call_operand.vmem [shape: f32[9,1,128], index: 0, kind: input, shape index: {}]   ;;  %s1363_s1 = inlined_call_operand.vmem [shape: bf16[160,128], index: 1, kind: input, shape index: {}]   ;;  %s1364_s2 = inlined_call_operand.vmem [shape: f32[16,128], index: 2, kind: input, shape index: {}]   ;;  %s1365_s3 = inlined_call_operand.vmem [shape: bf16[64,160], index: 3, kind: input, shape index: {}]   ;;  %s1366_s4 = inlined_call_operand.vmem [shape: bf16[80,160], index: 4, kind: input, shape index: {}]   ;;  %s1367_s5 = inlined_call_operand.vmem [shape: f32[5,1,128], index: 5, kind: output, shape index: {}]  }
   0x1 LB: > { %s1167_s19 = sadd.s32 4294967295, %s1119_s18   ;;  %p903_p0 = scmp.ge.s32.totalorder %s1119_s18, 1  ;;  %s1119_s18 = sphi %s1161_s18, %s15_s18  }
   0x2   : > { %p177_p1 = scmp.lt.s32.totalorder %s1119_s18, 6 }
   0x4   : > { %p178_p2 = pnand %p903_p0, %p177_p1 }
   0x5   : > { %p198_p3 = scmp.lt.s32.totalorder (!%p178_p2), %s1167_s19, 4  ;;  %p904_p4 = scmp.ne.s32.totalorder (!%p178_p2), %s1167_s19, 0 }
   0x6   : > { %181 = sbr.rel (%p178_p2) target bundleno = 736 (0x2e0), region = 40 }
   0xd   : > { %s1173_s20 = scalar_select %p198_p3, %s1167_s19, 4 }
   0xe   : > { %205 = sbr.rel (%p904_p4) target bundleno = 281 (0x119), region = 44  ;;  %v206_v0 = vld [vmem:[%s1364_s2] sm:$0xff] (!%p904_p4)  ;;  %v207_v1 = vld [vmem:[%s1364_s2 + $0x8] sm:$0xff] (!%p904_p4)  ;;  %v1121_v2 = vmov (!%p904_p4), 0   ;;  %v1036_v5 = vld [vmem:[%s1363_s1 + $0x10] sm:$0xff] (!%p904_p4)   ;;  %vm424_vm0 = vcmask (!%p904_p4), 261120  }
   0xf   : > { %s200_s23 = scalar_lea.vmem %s1367_s5, %s1173_s20  ;;  %208 = vst [vmem:[#allocation2] sm:$0xff] (!%p904_p4), %v206_v0  ;;  %209 = vst [vmem:[#allocation2 + $0x8] sm:$0xff] (!%p904_p4), %v207_v1  ;;  %437 = vmatprep.subr.bf16.mxu0 (!%p904_p4), %v1121_v2  ;;  %976 = vmatprep.subr.bf16.mxu1 (!%p904_p4), %v1121_v2  ;;  %v1034_v3 = vld [vmem:[%s1363_s1] sm:$0xff] (!%p904_p4)   ;;  %v1035_v4 = vld [vmem:[%s1363_s1 + $0x8] sm:$0xff] (!%p904_p4)  }
  0x10   : > { %v1037_v6 = vld [vmem:[%s1363_s1 + $0x18] sm:$0xff] (!%p904_p4)   ;;  %v1038_v7 = vld [vmem:[%s1363_s1 + $0x20] sm:$0xff] (!%p904_p4)   ;;  %v1039_v8 = vld [vmem:[%s1363_s1 + $0x28] sm:$0xff] (!%p904_p4)   ;;  %290 = vst [vmem:[#allocation3] sm:$0xff] (!%p904_p4), %v1034_v3 }
  0x11   : > { %v1040_v9 = vld [vmem:[%s1363_s1 + $0x30] sm:$0xff] (!%p904_p4)   ;;  %v1041_v10 = vld [vmem:[%s1363_s1 + $0x38] sm:$0xff] (!%p904_p4)   ;;  %291 = vst [vmem:[#allocation3 + $0x8] sm:$0xff] (!%p904_p4), %v1035_v4  ;;  %v1042_v11 = vld [vmem:[%s1363_s1 + $0x40] sm:$0xff] (!%p904_p4)  }
  0x12   : > { %v1043_v12 = vld [vmem:[%s1363_s1 + $0x48] sm:$0xff] (!%p904_p4)   ;;  %292 = vst [vmem:[#allocation3 + $0x10] sm:$0xff] (!%p904_p4), %v1036_v5  ;;  %293 = vst [vmem:[#allocation3 + $0x18] sm:$0xff] (!%p904_p4), %v1037_v6  ;;  %v1044_v13 = vld [vmem:[%s1363_s1] sm:$0xff] (!%p904_p4)  }
  0x13   : > { %294 = vst [vmem:[#allocation3 + $0x20] sm:$0xff] (!%p904_p4), %v1038_v7  ;;  %295 = vst [vmem:[#allocation3 + $0x28] sm:$0xff] (!%p904_p4), %v1039_v8  ;;  %438 = vmatpush1.bf16.msra.mxu0 (!%p904_p4), %v1044_v13  ;;  %986 = vmatpush1.bf16.msra.mxu1 (!%p904_p4), %v1044_v13  ;;  %v1045_v14 = vld [vmem:[%s1363_s1 + $0x8] sm:$0xff] (!%p904_p4)   ;;  %v1046_v15 = vld [vmem:[%s1363_s1 + $0x10] sm:$0xff] (!%p904_p4)  }
  0x14   : > { %296 = vst [vmem:[#allocation3 + $0x30] sm:$0xff] (!%p904_p4), %v1040_v9  ;;  %297 = vst [vmem:[#allocation3 + $0x38] sm:$0xff] (!%p904_p4), %v1041_v10  ;;  %439 = vmatprep.subr.bf16.mxu0 (!%p904_p4), %v1121_v2  ;;  %977 = vmatprep.subr.bf16.mxu1 (!%p904_p4), %v1121_v2  ;;  %v1047_v16 = vld [vmem:[%s1363_s1 + $0x18] sm:$0xff] (!%p904_p4)   ;;  %v1056_v17 = vld [vmem:[%s1365_s3 + $0x4] ss:$8 sps:$4 sm:$0xff] (!%p904_p4)  }
  0x15   : > { %298 = vst [vmem:[#allocation3 + $0x40] sm:$0xff] %v1042_v11  ;;  %299 = vst [vmem:[#allocation3 + $0x48] sm:$0xff] %v1043_v12  ;;  %933 = vmatprep.mubr.msk.bf16.mxu0 %vm424_vm0, %v1056_v17  ;;  %v1059_v18 = vld [vmem:[%s1365_s3 + $0x24] ss:$8 sps:$4 sm:$0xff]   ;;  %v1050_v21 = vld [vmem:[%s1363_s1 + $0x30] sm:$0xff]  }
  0x16   : > { %v1048_v19 = vld [vmem:[%s1363_s1 + $0x20] sm:$0xff]   ;;  %935 = vmatprep.mubr.msk.bf16.mxu1 %vm424_vm0, %v1059_v18  ;;  %v1049_v20 = vld [vmem:[%s1363_s1 + $0x28] sm:$0xff]   ;;  %v1051_v22 = vld [vmem:[%s1363_s1 + $0x38] sm:$0xff]  }
  0x17   : > { %440 = vmatpush1.bf16.msra.mxu0 %v1045_v14  ;;  %987 = vmatpush1.bf16.msra.mxu1 %v1045_v14  ;;  %v1052_v23 = vld [vmem:[%s1363_s1 + $0x40] sm:$0xff]   ;;  %v1053_v24 = vld [vmem:[%s1363_s1 + $0x48] sm:$0xff]   ;;  %v1060_v27 = vld [vmem:[%s1365_s3 + $0x14] ss:$8 sps:$4 sm:$0xff]  }
  0x18   : > { %441 = vmatprep.subr.bf16.mxu0 %v1121_v2  ;;  %978 = vmatprep.subr.bf16.mxu1 %v1121_v2  ;;  %v1054_v25 = vld [vmem:[%s1365_s3] ss:$8 sps:$4 sm:$0xff]   ;;  %v1062_v28 = vld [vmem:[%s1365_s3 + $0x34] ss:$8 sps:$4 sm:$0xff]   ;;  %v1064_v29 = vld [vmem:[%s1365_s3 + $0x10] ss:$8 sps:$4 sm:$0xff]  }
  0x19   : > { %v1057_v26 = vld [vmem:[%s1365_s3 + $0x20] ss:$8 sps:$4 sm:$0xff]   ;;  %v1065_v30 = vld [vmem:[%s1365_s3 + $0x30] ss:$8 sps:$4 sm:$0xff]  }
  0x1b   : > { %442 = vmatpush1.bf16.msra.mxu0 %v1046_v15  ;;  %988 = vmatpush1.bf16.msra.mxu1 %v1046_v15 }
  0x1c   : > { %443 = vmatprep.subr.bf16.mxu0 %v1121_v2  ;;  %979 = vmatprep.subr.bf16.mxu1 %v1121_v2 }
  0x1f   : > { %444 = vmatpush1.bf16.msra.mxu0 %v1047_v16  ;;  %989 = vmatpush1.bf16.msra.mxu1 %v1047_v16 }
  0x20   : > { %445 = vmatprep.subr.bf16.mxu0 %v1121_v2  ;;  %980 = vmatprep.subr.bf16.mxu1 %v1121_v2 }
  0x23   : > { %446 = vmatpush1.bf16.msra.mxu0 %v1048_v19  ;;  %990 = vmatpush1.bf16.msra.mxu1 %v1048_v19 }
  0x24   : > { %447 = vmatprep.subr.bf16.mxu0 %v1121_v2  ;;  %981 = vmatprep.subr.bf16.mxu1 %v1121_v2 }
  0x27   : > { %448 = vmatpush1.bf16.msra.mxu0 %v1049_v20  ;;  %991 = vmatpush1.bf16.msra.mxu1 %v1049_v20 }
  0x28   : > { %449 = vmatprep.subr.bf16.mxu0 %v1121_v2  ;;  %982 = vmatprep.subr.bf16.mxu1 %v1121_v2 }
  0x2b   : > { %450 = vmatpush1.bf16.msra.mxu0 %v1050_v21  ;;  %992 = vmatpush1.bf16.msra.mxu1 %v1050_v21 }
  0x2c   : > { %451 = vmatprep.subr.bf16.mxu0 %v1121_v2  ;;  %983 = vmatprep.subr.bf16.mxu1 %v1121_v2 }
  0x2f   : > { %452 = vmatpush1.bf16.msra.mxu0 %v1051_v22  ;;  %993 = vmatpush1.bf16.msra.mxu1 %v1051_v22 }
  0x30   : > { %453 = vmatprep.subr.bf16.mxu0 %v1121_v2  ;;  %984 = vmatprep.subr.bf16.mxu1 %v1121_v2 }
  0x33   : > { %454 = vmatpush1.bf16.msra.mxu0 %v1052_v23  ;;  %994 = vmatpush1.bf16.msra.mxu1 %v1052_v23 }
  0x34   : > { %455 = vmatprep.subr.bf16.mxu0 %v1121_v2  ;;  %985 = vmatprep.subr.bf16.mxu1 %v1121_v2 }
  0x37   : > { %456 = vmatpush1.bf16.msra.mxu0 %v1053_v24  ;;  %995 = vmatpush1.bf16.msra.mxu1 %v1053_v24 }
  0x3a   : > { %470 = vmatmul.mubr.bf16.vlgmr.msra.gmra.mrb[0].mxu0 %v1054_v25  ;;  %486 = vmatmul.mubr.bf16.vlgmr.msra.gmra.mrb[0].mxu1 %v1057_v26 }
  0x3b   : > { %934 = vmatprep.mubr.msk.bf16.mxu0 %vm424_vm0, %v1060_v27  ;;  %936 = vmatprep.mubr.msk.bf16.mxu1 %vm424_vm0, %v1062_v28 }
  0x42   : > { %478 = vmatmul.mubr.bf16.gmra.mrb[4].mxu0 %v1064_v29  ;;  %494 = vmatmul.mubr.bf16.gmra.mrb[4].mxu1 %v1065_v30 }
 0x10d   : > { %v471_v31 = vpop.f32.mrb[0].mxu0  ;;  %v487_v32 = vpop.f32.mrb[0].mxu1 }
 0x10e   : > { %502 = vst [vmem:[#allocation4] sm:$0xff] %v471_v31  ;;  %506 = vst [vmem:[#allocation4 + $0x20] sm:$0xff] %v487_v32  ;;  %v473_v33 = vpop.f32.mrb[1].mxu0  ;;  %v489_v34 = vpop.f32.mrb[1].mxu1 }
 0x10f   : > { %v474_v35 = vpop.f32.mrb[2].mxu0  ;;  %v490_v36 = vpop.f32.mrb[2].mxu1 }
 0x110   : > { %503 = vst [vmem:[#allocation4 + $0x8] sm:$0xff] %v474_v35  ;;  %507 = vst [vmem:[#allocation4 + $0x28] sm:$0xff] %v490_v36  ;;  %v476_v37 = vpop.f32.mrb[3].mxu0  ;;  %v492_v38 = vpop.f32.mrb[3].mxu1 }
 0x115   : > { %v479_v39 = vpop.f32.mrb[4].mxu0  ;;  %v495_v40 = vpop.f32.mrb[4].mxu1 }
 0x116   : > { %504 = vst [vmem:[#allocation4 + $0x10] sm:$0xff] %v479_v39  ;;  %508 = vst [vmem:[#allocation4 + $0x30] sm:$0xff] %v495_v40  ;;  %v481_v41 = vpop.f32.mrb[5].mxu0  ;;  %v497_v42 = vpop.f32.mrb[5].mxu1 }
 0x117   : > { %v482_v43 = vpop.f32.mrb[6].mxu0  ;;  %v498_v44 = vpop.f32.mrb[6].mxu1 }
 0x118   : > { %505 = vst [vmem:[#allocation4 + $0x18] sm:$0xff] %v482_v43  ;;  %509 = vst [vmem:[#allocation4 + $0x38] sm:$0xff] %v498_v44  ;;  %v484_v45 = vpop.f32.mrb[7].mxu0  ;;  %v500_v46 = vpop.f32.mrb[7].mxu1 }
 0x119 PF: > { %v1122_v48 = vmov 0   ;;  %v1068_v50 = vld [vmem:[%s1366_s4 + $0x4] ss:$8 sps:$4 sm:$0xff]   ;;  %vm575_vm1 = vcmask 261120   ;;  %v1071_v51 = vld [vmem:[%s1366_s4 + $0x34] ss:$8 sps:$4 sm:$0xff]  }
 0x11a   : > { %591 = vmatprep.subr.bf16.mxu0 %v1122_v48  ;;  %996 = vmatprep.subr.bf16.mxu1 %v1122_v48  ;;  %v1066_v60 = vld [vmem:[%s1366_s4] ss:$8 sps:$4 sm:$0xff]   ;;  %v1069_v61 = vld [vmem:[%s1366_s4 + $0x30] ss:$8 sps:$4 sm:$0xff]   ;;  %v1072_v62 = vld [vmem:[%s1366_s4 + $0x14] ss:$8 sps:$4 sm:$0xff]  }
 0x11b   : > { %v520_v47 = vld [vmem:[#allocation3] sm:$0xff]  ;;  %947 = vmatprep.mubr.msk.bf16.mxu0 %vm575_vm1, %v1068_v50  ;;  %950 = vmatprep.mubr.msk.bf16.mxu1 %vm575_vm1, %v1071_v51  ;;  %v1075_v63 = vld [vmem:[%s1366_s4 + $0x44] ss:$8 sps:$4 sm:$0xff]   ;;  %v1077_v1 = vld [vmem:[%s1366_s4 + $0x40] ss:$8 sps:$4 sm:$0xff]   ;;  %p952_p5 = scmp.ge.s32.totalorder %s1167_s19, 4 }
 0x11c   : > { %592 = vmatpush1.bf16.msra.mxu0 %v520_v47  ;;  %1006 = vmatpush1.bf16.msra.mxu1 %v520_v47  ;;  %v521_v49 = vld [vmem:[#allocation3 + $0x8] sm:$0xff]  ;;  %v1078_v2 = vld [vmem:[%s1366_s4 + $0x24] ss:$8 sps:$4 sm:$0xff]   ;;  %v1080_v3 = vld [vmem:[%s1366_s4 + $0x20] ss:$8 sps:$4 sm:$0xff]   ;;  %s1123_s19 = smov (!%p952_p5), 8  }
 0x11d   : > { %593 = vmatprep.subr.bf16.mxu0 %v1122_v48  ;;  %997 = vmatprep.subr.bf16.mxu1 %v1122_v48  ;;  %v522_v52 = vld [vmem:[#allocation3 + $0x10] sm:$0xff]  ;;  %v523_v53 = vld [vmem:[#allocation3 + $0x18] sm:$0xff]  ;;  %v1074_v0 = vld [vmem:[%s1366_s4 + $0x10] ss:$8 sps:$4 sm:$0xff]   ;;  %s1124_s20 = smov (!%p952_p5), 9   ;;  %s1126_s21 = smov (!%p952_p5), 1  }
 0x11e   : > { %v524_v54 = vld [vmem:[#allocation3 + $0x20] sm:$0xff]  ;;  %v525_v55 = vld [vmem:[#allocation3 + $0x28] sm:$0xff]  ;;  %v668_v24 = vld [vmem:[#allocation4] sm:$0xff] (!%p952_p5)  ;;  %s1127_s22 = smov (!%p952_p5), 127   ;;  %s1128_s24 = smov (!%p952_p5), 121  }
 0x11f   : > { %v526_v56 = vld [vmem:[#allocation3 + $0x30] sm:$0xff]  ;;  %v527_v57 = vld [vmem:[#allocation3 + $0x38] sm:$0xff]  ;;  %v670_v25 = vld [vmem:[#allocation4 + $0x10] sm:$0xff] (!%p952_p5)  ;;  %s1129_s25 = smov (!%p952_p5), 120   ;;  %s1130_s26 = smov (!%p952_p5), 119  }
 0x120   : > { %594 = vmatpush1.bf16.msra.mxu0 %v521_v49  ;;  %1007 = vmatpush1.bf16.msra.mxu1 %v521_v49  ;;  %v528_v58 = vld [vmem:[#allocation3 + $0x40] sm:$0xff]  ;;  %v529_v59 = vld [vmem:[#allocation3 + $0x48] sm:$0xff]  ;;  %v669_v28 = vld [vmem:[#allocation4 + $0x8] sm:$0xff] (!%p952_p5) }
 0x121   : > { %595 = vmatprep.subr.bf16.mxu0 %v1122_v48  ;;  %998 = vmatprep.subr.bf16.mxu1 %v1122_v48  ;;  %v671_v29 = vld [vmem:[#allocation4 + $0x18] sm:$0xff] (!%p952_p5)  ;;  %v672_v34 = vld [vmem:[#allocation4 + $0x20] sm:$0xff] (!%p952_p5)  ;;  %v673_v36 = vld [vmem:[#allocation4 + $0x28] sm:$0xff] (!%p952_p5) }
 0x122   : > { %v674_v38 = vld [vmem:[#allocation4 + $0x30] sm:$0xff] (!%p952_p5)  ;;  %v675_v42 = vld [vmem:[#allocation4 + $0x38] sm:$0xff] (!%p952_p5) }
 0x124   : > { %596 = vmatpush1.bf16.msra.mxu0 %v522_v52  ;;  %1008 = vmatpush1.bf16.msra.mxu1 %v522_v52 }
 0x125   : > { %597 = vmatprep.subr.bf16.mxu0 %v1122_v48  ;;  %999 = vmatprep.subr.bf16.mxu1 %v1122_v48 }
 0x128   : > { %598 = vmatpush1.bf16.msra.mxu0 %v523_v53  ;;  %1009 = vmatpush1.bf16.msra.mxu1 %v523_v53 }
 0x129   : > { %599 = vmatprep.subr.bf16.mxu0 %v1122_v48  ;;  %1000 = vmatprep.subr.bf16.mxu1 %v1122_v48 }
 0x12c   : > { %600 = vmatpush1.bf16.msra.mxu0 %v524_v54  ;;  %1010 = vmatpush1.bf16.msra.mxu1 %v524_v54 }
 0x12d   : > { %601 = vmatprep.subr.bf16.mxu0 %v1122_v48  ;;  %1001 = vmatprep.subr.bf16.mxu1 %v1122_v48 }
 0x130   : > { %602 = vmatpush1.bf16.msra.mxu0 %v525_v55  ;;  %1011 = vmatpush1.bf16.msra.mxu1 %v525_v55 }
 0x131   : > { %603 = vmatprep.subr.bf16.mxu0 %v1122_v48  ;;  %1002 = vmatprep.subr.bf16.mxu1 %v1122_v48 }
 0x134   : > { %604 = vmatpush1.bf16.msra.mxu0 %v526_v56  ;;  %1012 = vmatpush1.bf16.msra.mxu1 %v526_v56 }
 0x135   : > { %605 = vmatprep.subr.bf16.mxu0 %v1122_v48  ;;  %1003 = vmatprep.subr.bf16.mxu1 %v1122_v48 }
 0x138   : > { %606 = vmatpush1.bf16.msra.mxu0 %v527_v57  ;;  %1013 = vmatpush1.bf16.msra.mxu1 %v527_v57 }
 0x139   : > { %607 = vmatprep.subr.bf16.mxu0 %v1122_v48  ;;  %1004 = vmatprep.subr.bf16.mxu1 %v1122_v48 }
 0x13c   : > { %608 = vmatpush1.bf16.msra.mxu0 %v528_v58  ;;  %1014 = vmatpush1.bf16.msra.mxu1 %v528_v58  ;;  %v684_v58 = vld [vmem:[#allocation2] sm:$0xff] (!%p952_p5) }
 0x13d   : > { %609 = vmatprep.subr.bf16.mxu0 %v1122_v48  ;;  %1005 = vmatprep.subr.bf16.mxu1 %v1122_v48 }
 0x140   : > { %610 = vmatpush1.bf16.msra.mxu0 %v529_v59  ;;  %1015 = vmatpush1.bf16.msra.mxu1 %v529_v59 }
 0x143   : > { %624 = vmatmul.mubr.bf16.vlgmr.msra.gmra.mrb[0].mxu0 %v1066_v60  ;;  %648 = vmatmul.mubr.bf16.vlgmr.msra.gmra.mrb[0].mxu1 %v1069_v61 }
 0x144   : > { %948 = vmatprep.mubr.msk.bf16.mxu0 %vm575_vm1, %v1072_v62  ;;  %951 = vmatprep.mubr.msk.bf16.mxu1 %vm575_vm1, %v1075_v63 }
 0x14b   : > { %632 = vmatmul.mubr.bf16.gmra.mrb[4].mxu0 %v1074_v0  ;;  %656 = vmatmul.mubr.bf16.gmra.mrb[4].mxu1 %v1077_v1  ;;  %v685_v0 = vld [vmem:[#allocation2 + $0x8] sm:$0xff] (!%p952_p5) }
 0x14c   : > { %949 = vmatprep.mubr.msk.bf16.mxu0 %vm575_vm1, %v1078_v2 }
 0x153   : > { %640 = vmatmul.mubr.bf16.gmra.mrb[8].mxu0 %v1080_v3 }
 0x216   : > { %v625_v4 = vpop.f32.mrb[0].mxu0  ;;  %v649_v5 = vpop.f32.mrb[0].mxu1 }
 0x217   : > { %v627_v6 = vpop.f32.mrb[1].mxu0  ;;  %v651_v7 = vpop.f32.mrb[1].mxu1  ;;  %v676_v26 = vadd.f32 (!%p952_p5), %v668_v24, %v625_v4  ;;  %v682_v41 = vadd.f32 (!%p952_p5), %v674_v38, %v649_v5  ;;  %v967_v38 = vld [vmem:[%s1362_s0 + $0x5] ss:$0 sm:$0xff] (!%p952_p5) }
 0x218   : > { %v628_v8 = vpop.f32.mrb[2].mxu0  ;;  %v652_v9 = vpop.f32.mrb[2].mxu1 }
 0x219   : > { %v630_v10 = vpop.f32.mrb[3].mxu0  ;;  %v654_v11 = vpop.f32.mrb[3].mxu1  ;;  %v677_v30 = vadd.f32 (!%p952_p5), %v669_v28, %v628_v8  ;;  %v953_v31 = vmul.f32 (!%p952_p5), -1.442695, %v676_v26  ;;  %v683_v45 = vadd.f32 (!%p952_p5), %v675_v42, %v652_v9 }
 0x21b   : > { %v954_v35 = vmul.f32 (!%p952_p5), -1.442695, %v677_v30  ;;  %1081 = vpow2.f32 (!%p952_p5), %v953_v31 }
 0x21e   : > { %v633_v12 = vpop.f32.mrb[4].mxu0  ;;  %v657_v13 = vpop.f32.mrb[4].mxu1 }
 0x21f   : > { %v635_v14 = vpop.f32.mrb[5].mxu0  ;;  %663 = vst [vmem:[%s200_s23] sm:$0x1] %v657_v13  ;;  %v659_v15 = vpop.f32.mrb[5].mxu1  ;;  %v678_v27 = vadd.f32 (!%p952_p5), %v670_v25, %v633_v12  ;;  %s1125_s23 = smov (!%p952_p5), 7   ;;  %v963_v25 = vld [vmem:[%s1362_s0 + $0x2] ss:$0 sm:$0xff] (!%p952_p5) }
 0x220   : > { %v636_v16 = vpop.f32.mrb[6].mxu0  ;;  %v660_v17 = vpop.f32.mrb[6].mxu1 }
 0x221   : > { %v638_v18 = vpop.f32.mrb[7].mxu0  ;;  %v661_v19 = vpop.f32.mrb[7].mxu1  ;;  %v955_v32 = vmul.f32 (!%p952_p5), -1.442695, %v678_v27  ;;  %v679_v33 = vadd.f32 (!%p952_p5), %v671_v29, %v636_v16  ;;  %v961_v17 = vld [vmem:[%s1362_s0 + $0x1] ss:$0 sm:$0xff] (!%p952_p5) }
 0x222   : > { %v959_v18 = vld [vmem:[%s1362_s0] ss:$0 sm:$0xff] (!%p952_p5) }
 0x223   : > { %667 = sbr.rel (%p952_p5) target bundleno = 736 (0x2e0), region = 48  ;;  %v956_v37 = vmul.f32 (!%p952_p5), -1.442695, %v679_v33  ;;  %1083 = vpow2.f32 (!%p952_p5), %v955_v32  ;;  %v965_v32 = vld [vmem:[%s1362_s0 + $0x3] ss:$0 sm:$0xff] (!%p952_p5) }
 0x224   : > { %1085 = vpow2.f32 (!%p952_p5), %v954_v35 }
 0x225   : > { %1087 = vpow2.f32 (!%p952_p5), %v956_v37  ;;  %v1082_v46 = vpop.eup (!%p952_p5), %1081 }
 0x226   : > { %v641_v20 = vpop.f32.mrb[8].mxu0  ;;  %1089 = vtanh.f32 (!%p952_p5), %v682_v41  ;;  %v692_v48 = vadd.f32 (!%p952_p5), 1.0, %v1082_v46 }
 0x227   : > { %v643_v21 = vpop.f32.mrb[9].mxu0  ;;  %v680_v39 = vadd.f32 (!%p952_p5), %v672_v34, %v641_v20 }
 0x228   : > { %v644_v22 = vpop.f32.mrb[10].mxu0 }
 0x229   : > { %v646_v23 = vpop.f32.mrb[11].mxu0  ;;  %v681_v40 = vadd.f32 (!%p952_p5), %v673_v36, %v644_v22  ;;  %v957_v43 = vmul.f32 (!%p952_p5), -1.442695, %v680_v39 }
 0x22b   : > { %v958_v44 = vmul.f32 -1.442695, %v681_v40  ;;  %1091 = vpow2.f32 %v957_v43 }
 0x22d   : > { %v1084_v47 = vpop.eup %1083  ;;  %1093 = vpow2.f32 %v958_v44  ;;  %v969_v44 = vld [vmem:[%s1362_s0 + $0x6] ss:$0 sm:$0xff] }
 0x22e   : > { %v704_v49 = vadd.f32 1.0, %v1084_v47  ;;  %1095 = vtanh.f32 %v683_v45  ;;  %v1086_v50 = vpop.eup %1085 }
 0x22f   : > { %1097 = vrcp.f32 %v692_v48  ;;  %v1088_v51 = vpop.eup %1087  ;;  %v693_v52 = vadd.f32 1.0, %v1086_v50  ;;  %v971_v50 = vld [vmem:[%s1362_s0 + $0x7] ss:$0 sm:$0xff] }
 0x230   : > { %1099 = vrcp.f32 %v704_v49  ;;  %v705_v53 = vadd.f32 1.0, %v1088_v51  ;;  %v1090_v54 = vpop.eup %1089 }
 0x231   : > { %1101 = vrcp.f32 %v693_v52 }
 0x232   : > { %1103 = vrcp.f32 %v705_v53 }
 0x235   : > { %v1092_v55 = vpop.eup %1091 }
 0x236   : > { %v716_v60 = vadd.f32 1.0, %v1092_v55 }
 0x237   : > { %v1094_v56 = vpop.eup %1093 }
 0x238   : > { %v1096_v57 = vpop.eup %1095  ;;  %v717_v2 = vadd.f32 1.0, %v1094_v56  ;;  %1105 = vrcp.f32 %v716_v60  ;;  %v973_v56 = vld [vmem:[%s1362_s0 + $0x8] ss:$0 sm:$0xff] }
 0x239   : > { %v1098_v59 = vpop.eup %1097 }
 0x23a   : > { %v1100_v61 = vpop.eup %1099  ;;  %v726_v62 = vmul.f32 %v1098_v59, %v1090_v54 }
 0x23b   : > { %v724_v63 = vmul.f32 %v1100_v61, %v684_v58  ;;  %v1102_v1 = vpop.eup %1101 }
 0x23c   : > { %v1104_v3 = vpop.eup %1103  ;;  %v727_v5 = vmul.f32 %v1102_v1, %v1096_v57 }
 0x23d   : > { %v728_v4 = vadd.f32 %v726_v62, %v724_v63  ;;  %v725_v6 = vmul.f32 %v1104_v3, %v685_v0 }
 0x23f   : > { %1107 = vtanh.f32 %v728_v4  ;;  %734 = vst [vmem:[#allocation2] sm:$0xff] %v728_v4  ;;  %v729_v7 = vadd.f32 %v727_v5, %v725_v6 }
 0x240   : > { %1109 = vrcp.f32 %v717_v2 }
 0x241   : > { %1111 = vtanh.f32 %v729_v7  ;;  %735 = vst [vmem:[#allocation2 + $0x8] sm:$0xff] %v729_v7 }
 0x242   : > { %v1106_v8 = vpop.eup %1105 }
 0x249   : > { %v1108_v9 = vpop.eup %1107 }
 0x24a   : > { %v1110_v10 = vpop.eup %1109  ;;  %v732_v11 = vmul.f32 %v1108_v9, %v1106_v8 }
 0x24b   : > { %v1112_v12 = vpop.eup %1111 }
 0x24c   : > { %751 = vrot.lane.b32.xlu1 %v732_v11, %s1123_s19  ;;  %736 = vrot.lane.b32.xlu0 %v732_v11, %s1124_s20  ;;  %v733_v13 = vmul.f32 %v1112_v12, %v1110_v10 }
 0x24e   : > { %v799_v14 = vpack.c.bf16 %v733_v13, %v732_v11 }
 0x250   : > { %753 = vrot.lane.b32.xlu1 %v733_v13, %s1123_s19  ;;  %738 = vrot.lane.b32.xlu0 %v733_v13, %s1124_s20  ;;  %800 = vst [vmem:[#allocation3 + $0x20] sm:$0xff] %v799_v14 }
 0x254   : > { %769 = vrot.lane.b32.xlu1 %v733_v13, %s1125_s23  ;;  %767 = vrot.lane.b32.xlu0 %v732_v11, %s1125_s23 }
 0x258   : > { %785 = vrot.lane.b32.xlu1 %v733_v13, %s1126_s21  ;;  %783 = vrot.lane.b32.xlu0 %v732_v11, %s1126_s21 }
 0x25c   : > { %803 = vrot.lane.b32.xlu1 %v733_v13, %s1127_s22  ;;  %801 = vrot.lane.b32.xlu0 %v732_v11, %s1127_s22 }
 0x260   : > { %819 = vrot.lane.b32.xlu1 %v733_v13, %s1128_s24  ;;  %817 = vrot.lane.b32.xlu0 %v732_v11, %s1128_s24 }
 0x264   : > { %835 = vrot.lane.b32.xlu1 %v733_v13, %s1129_s25  ;;  %833 = vrot.lane.b32.xlu0 %v732_v11, %s1129_s25 }
 0x268   : > { %851 = vrot.lane.b32.xlu1 %v733_v13, %s1130_s26  ;;  %849 = vrot.lane.b32.xlu0 %v732_v11, %s1130_s26 }
 0x2be   : > { %v752_v15 = vpop.permute.xlu1 %751  ;;  %v737_v16 = vpop.permute.xlu0 %736 }
 0x2bf   : > { %v763_v21 = vmul.f32 %v961_v17, %v752_v15  ;;  %v747_v22 = vmul.f32 %v959_v18, %v737_v16 }
 0x2c2   : > { %v754_v19 = vpop.permute.xlu1 %753  ;;  %v739_v20 = vpop.permute.xlu0 %738 }
 0x2c3   : > { %v764_v23 = vmul.f32 %v961_v17, %v754_v19  ;;  %v748_v24 = vmul.f32 %v959_v18, %v739_v20 }
 0x2c5   : > { %v765_v26 = vpack.c.bf16 %v764_v23, %v763_v21  ;;  %v749_v27 = vpack.c.bf16 %v748_v24, %v747_v22 }
 0x2c6   : > { %v770_v28 = vpop.permute.xlu1 %769  ;;  %v768_v29 = vpop.permute.xlu0 %767 }
 0x2c7   : > { %766 = vst [vmem:[#allocation3 + $0x8] sm:$0xff] %v765_v26  ;;  %750 = vst [vmem:[#allocation3] sm:$0xff] %v749_v27  ;;  %v780_v30 = vmul.f32 %v963_v25, %v770_v28  ;;  %v779_v31 = vmul.f32 %v963_v25, %v768_v29 }
 0x2c9   : > { %v781_v33 = vpack.c.bf16 %v780_v30, %v779_v31 }
 0x2ca   : > { %v786_v34 = vpop.permute.xlu1 %785  ;;  %v784_v35 = vpop.permute.xlu0 %783 }
 0x2cb   : > { %782 = vst [vmem:[#allocation3 + $0x10] sm:$0xff] %v781_v33  ;;  %v796_v36 = vmul.f32 %v965_v32, %v786_v34  ;;  %v795_v37 = vmul.f32 %v965_v32, %v784_v35 }
 0x2cd   : > { %v797_v39 = vpack.c.bf16 %v796_v36, %v795_v37 }
 0x2ce   : > { %v804_v40 = vpop.permute.xlu1 %803  ;;  %v802_v41 = vpop.permute.xlu0 %801 }
 0x2cf   : > { %798 = vst [vmem:[#allocation3 + $0x18] sm:$0xff] %v797_v39  ;;  %v814_v42 = vmul.f32 %v967_v38, %v804_v40  ;;  %v813_v43 = vmul.f32 %v967_v38, %v802_v41 }
 0x2d1   : > { %v815_v45 = vpack.c.bf16 %v814_v42, %v813_v43 }
 0x2d2   : > { %v820_v46 = vpop.permute.xlu1 %819  ;;  %v818_v47 = vpop.permute.xlu0 %817 }
 0x2d3   : > { %816 = vst [vmem:[#allocation3 + $0x28] sm:$0xff] %v815_v45  ;;  %v830_v48 = vmul.f32 %v969_v44, %v820_v46  ;;  %v829_v49 = vmul.f32 %v969_v44, %v818_v47 }
 0x2d5   : > { %v831_v51 = vpack.c.bf16 %v830_v48, %v829_v49 }
 0x2d6   : > { %v836_v52 = vpop.permute.xlu1 %835  ;;  %v834_v53 = vpop.permute.xlu0 %833 }
 0x2d7   : > { %832 = vst [vmem:[#allocation3 + $0x30] sm:$0xff] %v831_v51  ;;  %v846_v54 = vmul.f32 %v971_v50, %v836_v52  ;;  %v845_v55 = vmul.f32 %v971_v50, %v834_v53 }
 0x2d9   : > { %v847_v57 = vpack.c.bf16 %v846_v54, %v845_v55 }
 0x2da   : > { %v852_v58 = vpop.permute.xlu1 %851  ;;  %v850_v59 = vpop.permute.xlu0 %849 }
 0x2db   : > { %848 = vst [vmem:[#allocation3 + $0x38] sm:$0xff] %v847_v57  ;;  %v862_v60 = vmul.f32 %v973_v56, %v852_v58  ;;  %v861_v61 = vmul.f32 %v973_v56, %v850_v59 }
 0x2dd   : > { %v863_v62 = vpack.c.bf16 %v862_v60, %v861_v61 }
 0x2df   : > { %864 = vst [vmem:[#allocation3 + $0x40] sm:$0xff] %v863_v62 }
 0x2e0 PF: > { %s15_s18 = sadd.s32 1, %s1119_s18  }
 0x2e1   : > { %p12_p6 = scmp.ge.s32.totalorder %s15_s18, 7  }
 0x2e3   :  { %14 = sbr.rel (!%p12_p6) target bundleno = 1 (0x1), region = 82 }

</bundles_post_ra>
